<compile_context>
chip_gen: v7x
topology: tpu7x:2x2x1
jax: 0.10.0
libtpu: 0.0.40
codegen_flags: <defaults>
</compile_context>

<pallas_src>
import functools

import jax
import jax.numpy as jnp
from jax.experimental import pallas as pl
from jax.experimental.pallas import tpu as pltpu


IN_PAD = 16      # input features padded 10 -> 16 (zero rows appended to W0)
HEAD_PAD = 8     # head output padded 7 -> 8: [mu(6), fused scale logit, 0]
MAX_TB = 1024    # upper bound on batch tile; working set stays < 2 MiB


def _choose_tiling(batch):
    """Pick (TB, b_pad): TB a multiple of 128, at most MAX_TB, and >= 2 grid
    steps once the padded batch exceeds 256 rows (v7x megacore sharding)."""
    b128 = -(-batch // 128) * 128
    if b128 <= 256:
        tb = 128
    else:
        tb = min(MAX_TB, (b128 // 2 // 128) * 128)
    b_pad = -(-b128 // tb) * tb
    return tb, b_pad


def _use_bf16_epilogue():
    """bf16 bias+LeakyReLU epilogue only on generations with a bf16 VPU."""
    try:
        dev = jax.devices()[0]
        if dev.platform != "tpu":
            return False
        kind = dev.device_kind.lower()
        return ("v6" in kind) or ("v7" in kind)
    except Exception:
        return False


# ---------------------------------------------------------------------------
# Pallas kernel: bf16 MLP trunk + fused (mu | scale-logit) head
# ---------------------------------------------------------------------------
def _simple_mlp_kernel(x_ref,
                       w0, b0, w1, b1, w2, b2, w3, b3, w4, b4,
                       wh, bh,
                       out_ref, *, bf16_epilogue):
    def layer(h, w, b):
        a = jnp.dot(h, w[...], preferred_element_type=jnp.float32)   # MXU, f32 acc
        if bf16_epilogue:
            # v6e/v7x: native bf16 VALU -> half the epilogue ops / vreg pressure.
            a = a.astype(jnp.bfloat16) + b[...]
            return jnp.maximum(a, 0.01 * a)          # LeakyReLU(0.01), single vmax
        # v5e: no bf16 VPU -> epilogue stays f32, downcast once at the end.
        a = a + b[...]
        a = jnp.maximum(a, 0.01 * a)
        return a.astype(jnp.bfloat16)

    h = x_ref[...]                                    # (TB, 16) bf16
    h = layer(h, w0, b0)
    h = layer(h, w1, b1)
    h = layer(h, w2, b2)
    h = layer(h, w3, b3)
    h = layer(h, w4, b4)

    # Fused head: cols 0..5 = layer_mu, col 6 = layer_scale(layer_mu(.)),
    # col 7 = 0.  Valid because the reference has no activation between
    # layer_mu and layer_scale.
    out_ref[...] = (jnp.dot(h, wh[...], preferred_element_type=jnp.float32)
                    + bh[...])                        # (TB, 8) f32


# ---------------------------------------------------------------------------
# lietorch SO3 glue (plain JAX, tiny elementwise math)
# ---------------------------------------------------------------------------
def quat_to_rotmat(q):
    """q: (B, 4) unit quaternion (x, y, z, w) -> (B, 3, 3) rotation matrix."""
    x, y, z, w = q[:, 0], q[:, 1], q[:, 2], q[:, 3]
    R = jnp.stack([
        1 - 2 * (y * y + z * z), 2 * (x * y - z * w), 2 * (x * z + y * w),
        2 * (x * y + z * w), 1 - 2 * (x * x + z * z), 2 * (y * z - x * w),
        2 * (x * z - y * w), 2 * (y * z + x * w), 1 - 2 * (x * x + y * y),
    ], axis=-1)
    return R.reshape(-1, 3, 3)


def rotmat_to_quat(R):
    """R: (B, 3, 3) -> quaternion (B, 4) in (x, y, z, w) order."""
    # TODO(synk): lietorch's from_rotation_matrix sign convention (q vs -q) may
    # differ; both represent the same rotation.
    m00, m01, m02 = R[:, 0, 0], R[:, 0, 1], R[:, 0, 2]
    m10, m11, m12 = R[:, 1, 0], R[:, 1, 1], R[:, 1, 2]
    m20, m21, m22 = R[:, 2, 0], R[:, 2, 1], R[:, 2, 2]
    tr = m00 + m11 + m22

    def ssqrt(v):
        return jnp.sqrt(jnp.maximum(v, 1e-12))

    sw = ssqrt(1.0 + tr)
    w0, x0, y0, z0 = 0.5 * sw, (m21 - m12) / (2 * sw), (m02 - m20) / (2 * sw), (m10 - m01) / (2 * sw)
    sx = ssqrt(1.0 + m00 - m11 - m22)
    x1, w1, y1, z1 = 0.5 * sx, (m21 - m12) / (2 * sx), (m01 + m10) / (2 * sx), (m02 + m20) / (2 * sx)
    sy = ssqrt(1.0 - m00 + m11 - m22)
    y2, w2, x2, z2 = 0.5 * sy, (m02 - m20) / (2 * sy), (m01 + m10) / (2 * sy), (m12 + m21) / (2 * sy)
    sz = ssqrt(1.0 - m00 - m11 + m22)
    z3, w3, x3, y3 = 0.5 * sz, (m10 - m01) / (2 * sz), (m02 + m20) / (2 * sz), (m12 + m21) / (2 * sz)

    c0 = tr > 0.0
    c1 = (m00 >= m11) & (m00 >= m22)
    c2 = m11 >= m22

    def sel(a0, a1, a2, a3):
        return jnp.where(c0, a0, jnp.where(c1, a1, jnp.where(c2, a2, a3)))

    return jnp.stack([sel(x0, x1, x2, x3), sel(y0, y1, y2, y3),
                      sel(z0, z1, z2, z3), sel(w0, w1, w2, w3)], axis=-1)


# ---------------------------------------------------------------------------
# Parameter init (matches torch.nn.Linear default init, deterministic)
# Weights are stored transposed vs torch: (in, out).
# ---------------------------------------------------------------------------
def init_params(key):
    sizes = [(10, 256), (256, 256), (256, 256), (256, 256), (256, 256),
             (256, 6), (6, 1)]
    params = []
    for fan_in, fan_out in sizes:
        key, kw, kb = jax.random.split(key, 3)
        bound = float(fan_in) ** -0.5
        w = jax.random.uniform(kw, (fan_in, fan_out), jnp.float32, -bound, bound)
        b = jax.random.uniform(kb, (1, fan_out), jnp.float32, -bound, bound)
        params += [w, b]
    return params


def prepare_kernel_params(params, *, bf16_epilogue=False):
    """Pad W0 to 16 input features, fold the scale head into the mu head,
    cast weights to bf16.  Trunk biases are bf16 only when the epilogue runs
    in bf16 (v6e/v7x); head bias stays f32 (f32 accumulate + f32 output).
    Call this ONCE and pass the result into the jitted forward."""
    (w0, b0, w1, b1, w2, b2, w3, b3, w4, b4, wmu, bmu, wsc, bsc) = params

    w0p = jnp.zeros((IN_PAD, 256), jnp.float32).at[:10, :].set(w0)

    # head: cols 0..5 = wmu, col 6 = wmu @ wsc (fused layer_scale), col 7 = 0
    wh = (jnp.zeros((256, HEAD_PAD), jnp.float32)
          .at[:, 0:6].set(wmu)
          .at[:, 6:7].set(wmu @ wsc))
    bh = (jnp.zeros((1, HEAD_PAD), jnp.float32)
          .at[:, 0:6].set(bmu)
          .at[:, 6:7].set(bmu @ wsc + bsc))

    bf = lambda a: a.astype(jnp.bfloat16)
    bias_dtype = jnp.bfloat16 if bf16_epilogue else jnp.float32
    cb = lambda b: b.astype(bias_dtype)
    return [bf(w0p), cb(b0), bf(w1), cb(b1), bf(w2), cb(b2), bf(w3), cb(b3),
            bf(w4), cb(b4), bf(wh), bh]


# ---------------------------------------------------------------------------
# Wrapper
# ---------------------------------------------------------------------------
def simple_mlp_forward(x_quat, s, kparams, *, bf16_epilogue=False):
    B = x_quat.shape[0]
    tb, b_pad = _choose_tiling(B)

    rot9 = quat_to_rotmat(x_quat).reshape(B, 9)
    concat = jnp.concatenate([rot9, s.astype(jnp.float32)], axis=-1)   # (B, 10)
    concat = jnp.pad(concat, ((0, b_pad - B), (0, IN_PAD - concat.shape[1])))
    concat = concat.astype(jnp.bfloat16)                               # (b_pad, 16)

    # Constant index_map -> weight blocks stay VMEM-resident across grid steps.
    # (pl.Buffered(1) single-buffering skipped: ~0.7 MiB of weights, VMEM is
    #  not the binding constraint on any generation.)
    def weight_spec(p):
        return pl.BlockSpec(p.shape, lambda i: (0, 0))

    flops = 2 * b_pad * (IN_PAD * 256 + 4 * 256 * 256 + 256 * HEAD_PAD)
    param_bytes = sum(int(p.size) * p.dtype.itemsize for p in kparams)
    bytes_accessed = b_pad * (IN_PAD * 2 + HEAD_PAD * 4) + param_bytes

    head = pl.pallas_call(
        functools.partial(_simple_mlp_kernel, bf16_epilogue=bf16_epilogue),
        out_shape=jax.ShapeDtypeStruct((b_pad, HEAD_PAD), jnp.float32),
        grid=(b_pad // tb,),
        in_specs=[pl.BlockSpec((tb, IN_PAD), lambda i: (i, 0))]
                 + [weight_spec(p) for p in kparams],
        out_specs=pl.BlockSpec((tb, HEAD_PAD), lambda i: (i, 0)),
        compiler_params=pltpu.CompilerParams(
            dimension_semantics=("parallel",)),
        cost_estimate=pl.CostEstimate(
            flops=int(flops),
            transcendentals=0,
            bytes_accessed=int(bytes_accessed)),
    )(concat, *kparams)

    head = head[:B]
    mu = head[:, 0:6]
    scale = jax.nn.softplus(head[:, 6:7]) + 0.0001                     # (B, 1)

    # Gram-Schmidt via cross products (torch semantics), plain JAX; rsqrt is
    # clamped against degenerate mu.
    v1 = mu[:, 0:3]
    v2 = mu[:, 3:6]
    r1 = v1 * jax.lax.rsqrt(jnp.maximum(jnp.sum(v1 * v1, -1, keepdims=True), 1e-12))
    c3 = jnp.cross(r1, v2)
    r3 = c3 * jax.lax.rsqrt(jnp.maximum(jnp.sum(c3 * c3, -1, keepdims=True), 1e-12))
    r2 = jnp.cross(r3, r1)
    rotation_matrix = jnp.stack([r1, r2, r3], axis=-1)                 # (B, 3, 3)
    quat = rotmat_to_quat(rotation_matrix)
    return quat, scale


if __name__ == "__main__":
    key = jax.random.PRNGKey(0)
    kp, kx, ks = jax.random.split(key, 3)

    params = init_params(kp)
    bf16_ep = _use_bf16_epilogue()

    # Hoisted out of the hot path: runs exactly once.
    kparams = prepare_kernel_params(params, bf16_epilogue=bf16_ep)
    jax.block_until_ready(kparams)

    B = 8
    q_raw = jax.random.normal(kx, (B, 4), jnp.float32)
    x_quat = q_raw / jnp.linalg.norm(q_raw, axis=-1, keepdims=True)    # unit quats
    s = jax.random.normal(ks, (B, 1), jnp.float32)

    fwd = jax.jit(functools.partial(simple_mlp_forward, bf16_epilogue=bf16_ep))
    quat, scale = fwd(x_quat, s, kparams)
    jax.block_until_ready((quat, scale))

    assert quat.shape == (B, 4) and scale.shape == (B, 1)
    assert bool(jnp.all(jnp.isfinite(quat))) and bool(jnp.all(scale > 0))
    print("KERNEL_OK")
</pallas_src>

<mosaic_0001>
module attributes {stable_mosaic.version = 11 : i64} {
  func.func @_simple_mlp_kernel(%arg0: i32, %arg1: memref<128x16xbf16, #tpu.memory_space<vmem>>, %arg2: memref<16x256xbf16, #tpu.memory_space<vmem>>, %arg3: memref<1x256xf32, #tpu.memory_space<vmem>>, %arg4: memref<256x256xbf16, #tpu.memory_space<vmem>>, %arg5: memref<1x256xf32, #tpu.memory_space<vmem>>, %arg6: memref<256x256xbf16, #tpu.memory_space<vmem>>, %arg7: memref<1x256xf32, #tpu.memory_space<vmem>>, %arg8: memref<256x256xbf16, #tpu.memory_space<vmem>>, %arg9: memref<1x256xf32, #tpu.memory_space<vmem>>, %arg10: memref<256x256xbf16, #tpu.memory_space<vmem>>, %arg11: memref<1x256xf32, #tpu.memory_space<vmem>>, %arg12: memref<256x8xbf16, #tpu.memory_space<vmem>>, %arg13: memref<1x8xf32, #tpu.memory_space<vmem>>, %arg14: memref<128x8xf32, #tpu.memory_space<vmem>>) attributes {dimension_semantics = [#tpu.dimension_semantics<parallel>], iteration_bounds = array<i64: 1>, scalar_prefetch = 0 : i64, scratch_operands = 0 : i64, tpu.core_type = #tpu.core_type<tc>, window_params = [{transform_indices = @transform_0, window_bounds = array<i64: 128, 16>}, {pipeline_mode = #tpu.pipeline_mode<synchronous>, transform_indices = @transform_1, window_bounds = array<i64: 16, 256>}, {pipeline_mode = #tpu.pipeline_mode<synchronous>, transform_indices = @transform_2, window_bounds = array<i64: 1, 256>}, {pipeline_mode = #tpu.pipeline_mode<synchronous>, transform_indices = @transform_3, window_bounds = array<i64: 256, 256>}, {pipeline_mode = #tpu.pipeline_mode<synchronous>, transform_indices = @transform_4, window_bounds = array<i64: 1, 256>}, {pipeline_mode = #tpu.pipeline_mode<synchronous>, transform_indices = @transform_5, window_bounds = array<i64: 256, 256>}, {pipeline_mode = #tpu.pipeline_mode<synchronous>, transform_indices = @transform_6, window_bounds = array<i64: 1, 256>}, {pipeline_mode = #tpu.pipeline_mode<synchronous>, transform_indices = @transform_7, window_bounds = array<i64: 256, 256>}, {pipeline_mode = #tpu.pipeline_mode<synchronous>, transform_indices = @transform_8, window_bounds = array<i64: 1, 256>}, {pipeline_mode = #tpu.pipeline_mode<synchronous>, transform_indices = @transform_9, window_bounds = array<i64: 256, 256>}, {pipeline_mode = #tpu.pipeline_mode<synchronous>, transform_indices = @transform_10, window_bounds = array<i64: 1, 256>}, {pipeline_mode = #tpu.pipeline_mode<synchronous>, transform_indices = @transform_11, window_bounds = array<i64: 256, 8>}, {pipeline_mode = #tpu.pipeline_mode<synchronous>, transform_indices = @transform_12, window_bounds = array<i64: 1, 8>}, {transform_indices = @transform_13, window_bounds = array<i64: 128, 8>}]} {
    %c0 = arith.constant 0 : index
    %c0_0 = arith.constant 0 : index
    %0 = vector.load %arg1[%c0, %c0_0] : memref<128x16xbf16, #tpu.memory_space<vmem>>, vector<128x16xbf16>
    %c0_1 = arith.constant 0 : index
    %c0_2 = arith.constant 0 : index
    %1 = vector.load %arg2[%c0_1, %c0_2] : memref<16x256xbf16, #tpu.memory_space<vmem>>, vector<16x256xbf16>
    %cst = arith.constant dense<0.000000e+00> : vector<128x256xf32>
    %2 = tpu.matmul %0, %1, %cst {dimension_numbers = #tpu.dot_dimension_numbers<[1], [0], [0], [1], [0, 0, 1, 1], [], []>} : vector<128x16xbf16>, vector<16x256xbf16>, vector<128x256xf32> -> vector<128x256xf32>
    %c0_3 = arith.constant 0 : index
    %c0_4 = arith.constant 0 : index
    %3 = vector.load %arg3[%c0_3, %c0_4] : memref<1x256xf32, #tpu.memory_space<vmem>>, vector<1x256xf32>
    %4 = vector.broadcast %3 : vector<1x256xf32> to vector<128x256xf32>
    %5 = arith.addf %2, %4 : vector<128x256xf32>
    %cst_5 = arith.constant 0.00999999977 : f32
    %6 = vector.broadcast %cst_5 : f32 to vector<128x256xf32>
    %7 = arith.mulf %6, %5 : vector<128x256xf32>
    %8 = arith.maximumf %5, %7 : vector<128x256xf32>
    %9 = arith.truncf %8 : vector<128x256xf32> to vector<128x256xbf16>
    %c0_6 = arith.constant 0 : index
    %c0_7 = arith.constant 0 : index
    %10 = vector.load %arg4[%c0_6, %c0_7] : memref<256x256xbf16, #tpu.memory_space<vmem>>, vector<256x256xbf16>
    %cst_8 = arith.constant dense<0.000000e+00> : vector<128x256xf32>
    %11 = tpu.matmul %9, %10, %cst_8 {dimension_numbers = #tpu.dot_dimension_numbers<[1], [0], [0], [1], [0, 0, 1, 1], [], []>} : vector<128x256xbf16>, vector<256x256xbf16>, vector<128x256xf32> -> vector<128x256xf32>
    %c0_9 = arith.constant 0 : index
    %c0_10 = arith.constant 0 : index
    %12 = vector.load %arg5[%c0_9, %c0_10] : memref<1x256xf32, #tpu.memory_space<vmem>>, vector<1x256xf32>
    %13 = vector.broadcast %12 : vector<1x256xf32> to vector<128x256xf32>
    %14 = arith.addf %11, %13 : vector<128x256xf32>
    %cst_11 = arith.constant 0.00999999977 : f32
    %15 = vector.broadcast %cst_11 : f32 to vector<128x256xf32>
    %16 = arith.mulf %15, %14 : vector<128x256xf32>
    %17 = arith.maximumf %14, %16 : vector<128x256xf32>
    %18 = arith.truncf %17 : vector<128x256xf32> to vector<128x256xbf16>
    %c0_12 = arith.constant 0 : index
    %c0_13 = arith.constant 0 : index
    %19 = vector.load %arg6[%c0_12, %c0_13] : memref<256x256xbf16, #tpu.memory_space<vmem>>, vector<256x256xbf16>
    %cst_14 = arith.constant dense<0.000000e+00> : vector<128x256xf32>
    %20 = tpu.matmul %18, %19, %cst_14 {dimension_numbers = #tpu.dot_dimension_numbers<[1], [0], [0], [1], [0, 0, 1, 1], [], []>} : vector<128x256xbf16>, vector<256x256xbf16>, vector<128x256xf32> -> vector<128x256xf32>
    %c0_15 = arith.constant 0 : index
    %c0_16 = arith.constant 0 : index
    %21 = vector.load %arg7[%c0_15, %c0_16] : memref<1x256xf32, #tpu.memory_space<vmem>>, vector<1x256xf32>
    %22 = vector.broadcast %21 : vector<1x256xf32> to vector<128x256xf32>
    %23 = arith.addf %20, %22 : vector<128x256xf32>
    %cst_17 = arith.constant 0.00999999977 : f32
    %24 = vector.broadcast %cst_17 : f32 to vector<128x256xf32>
    %25 = arith.mulf %24, %23 : vector<128x256xf32>
    %26 = arith.maximumf %23, %25 : vector<128x256xf32>
    %27 = arith.truncf %26 : vector<128x256xf32> to vector<128x256xbf16>
    %c0_18 = arith.constant 0 : index
    %c0_19 = arith.constant 0 : index
    %28 = vector.load %arg8[%c0_18, %c0_19] : memref<256x256xbf16, #tpu.memory_space<vmem>>, vector<256x256xbf16>
    %cst_20 = arith.constant dense<0.000000e+00> : vector<128x256xf32>
    %29 = tpu.matmul %27, %28, %cst_20 {dimension_numbers = #tpu.dot_dimension_numbers<[1], [0], [0], [1], [0, 0, 1, 1], [], []>} : vector<128x256xbf16>, vector<256x256xbf16>, vector<128x256xf32> -> vector<128x256xf32>
    %c0_21 = arith.constant 0 : index
    %c0_22 = arith.constant 0 : index
    %30 = vector.load %arg9[%c0_21, %c0_22] : memref<1x256xf32, #tpu.memory_space<vmem>>, vector<1x256xf32>
    %31 = vector.broadcast %30 : vector<1x256xf32> to vector<128x256xf32>
    %32 = arith.addf %29, %31 : vector<128x256xf32>
    %cst_23 = arith.constant 0.00999999977 : f32
    %33 = vector.broadcast %cst_23 : f32 to vector<128x256xf32>
    %34 = arith.mulf %33, %32 : vector<128x256xf32>
    %35 = arith.maximumf %32, %34 : vector<128x256xf32>
    %36 = arith.truncf %35 : vector<128x256xf32> to vector<128x256xbf16>
    %c0_24 = arith.constant 0 : index
    %c0_25 = arith.constant 0 : index
    %37 = vector.load %arg10[%c0_24, %c0_25] : memref<256x256xbf16, #tpu.memory_space<vmem>>, vector<256x256xbf16>
    %cst_26 = arith.constant dense<0.000000e+00> : vector<128x256xf32>
    %38 = tpu.matmul %36, %37, %cst_26 {dimension_numbers = #tpu.dot_dimension_numbers<[1], [0], [0], [1], [0, 0, 1, 1], [], []>} : vector<128x256xbf16>, vector<256x256xbf16>, vector<128x256xf32> -> vector<128x256xf32>
    %c0_27 = arith.constant 0 : index
    %c0_28 = arith.constant 0 : index
    %39 = vector.load %arg11[%c0_27, %c0_28] : memref<1x256xf32, #tpu.memory_space<vmem>>, vector<1x256xf32>
    %40 = vector.broadcast %39 : vector<1x256xf32> to vector<128x256xf32>
    %41 = arith.addf %38, %40 : vector<128x256xf32>
    %cst_29 = arith.constant 0.00999999977 : f32
    %42 = vector.broadcast %cst_29 : f32 to vector<128x256xf32>
    %43 = arith.mulf %42, %41 : vector<128x256xf32>
    %44 = arith.maximumf %41, %43 : vector<128x256xf32>
    %45 = arith.truncf %44 : vector<128x256xf32> to vector<128x256xbf16>
    %c0_30 = arith.constant 0 : index
    %c0_31 = arith.constant 0 : index
    %46 = vector.load %arg12[%c0_30, %c0_31] : memref<256x8xbf16, #tpu.memory_space<vmem>>, vector<256x8xbf16>
    %cst_32 = arith.constant dense<0.000000e+00> : vector<128x8xf32>
    %47 = tpu.matmul %45, %46, %cst_32 {dimension_numbers = #tpu.dot_dimension_numbers<[1], [0], [0], [1], [0, 0, 1, 1], [], []>} : vector<128x256xbf16>, vector<256x8xbf16>, vector<128x8xf32> -> vector<128x8xf32>
    %c0_33 = arith.constant 0 : index
    %c0_34 = arith.constant 0 : index
    %48 = vector.load %arg13[%c0_33, %c0_34] : memref<1x8xf32, #tpu.memory_space<vmem>>, vector<1x8xf32>
    %49 = vector.broadcast %48 : vector<1x8xf32> to vector<128x8xf32>
    %50 = arith.addf %47, %49 : vector<128x8xf32>
    %c0_35 = arith.constant 0 : index
    %c0_36 = arith.constant 0 : index
    %51 = vector.load %arg14[%c0_35, %c0_36] : memref<128x8xf32, #tpu.memory_space<vmem>>, vector<128x8xf32>
    tpu.vector_store %arg14[%c0_35, %c0_36], %50 {strides = array<i32>} : memref<128x8xf32, #tpu.memory_space<vmem>>, vector<128x8xf32>,
    return
  }
  func.func @transform_0(%arg0: i32) -> (i32, i32) {
    %c0_i32 = arith.constant 0 : i32
    %c0_i32_0 = arith.constant 0 : i32
    return %arg0, %c0_i32 : i32, i32
  }
  func.func @transform_1(%arg0: i32) -> (i32, i32) {
    %c0_i32 = arith.constant 0 : i32
    %c0_i32_0 = arith.constant 0 : i32
    %c0_i32_1 = arith.constant 0 : i32
    return %c0_i32, %c0_i32_0 : i32, i32
  }
  func.func @transform_2(%arg0: i32) -> (i32, i32) {
    %c0_i32 = arith.constant 0 : i32
    %c0_i32_0 = arith.constant 0 : i32
    %c0_i32_1 = arith.constant 0 : i32
    return %c0_i32, %c0_i32_0 : i32, i32
  }
  func.func @transform_3(%arg0: i32) -> (i32, i32) {
    %c0_i32 = arith.constant 0 : i32
    %c0_i32_0 = arith.constant 0 : i32
    %c0_i32_1 = arith.constant 0 : i32
    return %c0_i32, %c0_i32_0 : i32, i32
  }
  func.func @transform_4(%arg0: i32) -> (i32, i32) {
    %c0_i32 = arith.constant 0 : i32
    %c0_i32_0 = arith.constant 0 : i32
    %c0_i32_1 = arith.constant 0 : i32
    return %c0_i32, %c0_i32_0 : i32, i32
  }
  func.func @transform_5(%arg0: i32) -> (i32, i32) {
    %c0_i32 = arith.constant 0 : i32
    %c0_i32_0 = arith.constant 0 : i32
    %c0_i32_1 = arith.constant 0 : i32
    return %c0_i32, %c0_i32_0 : i32, i32
  }
  func.func @transform_6(%arg0: i32) -> (i32, i32) {
    %c0_i32 = arith.constant 0 : i32
    %c0_i32_0 = arith.constant 0 : i32
    %c0_i32_1 = arith.constant 0 : i32
    return %c0_i32, %c0_i32_0 : i32, i32
  }
  func.func @transform_7(%arg0: i32) -> (i32, i32) {
    %c0_i32 = arith.constant 0 : i32
    %c0_i32_0 = arith.constant 0 : i32
    %c0_i32_1 = arith.constant 0 : i32
    return %c0_i32, %c0_i32_0 : i32, i32
  }
  func.func @transform_8(%arg0: i32) -> (i32, i32) {
    %c0_i32 = arith.constant 0 : i32
    %c0_i32_0 = arith.constant 0 : i32
    %c0_i32_1 = arith.constant 0 : i32
    return %c0_i32, %c0_i32_0 : i32, i32
  }
  func.func @transform_9(%arg0: i32) -> (i32, i32) {
    %c0_i32 = arith.constant 0 : i32
    %c0_i32_0 = arith.constant 0 : i32
    %c0_i32_1 = arith.constant 0 : i32
    return %c0_i32, %c0_i32_0 : i32, i32
  }
  func.func @transform_10(%arg0: i32) -> (i32, i32) {
    %c0_i32 = arith.constant 0 : i32
    %c0_i32_0 = arith.constant 0 : i32
    %c0_i32_1 = arith.constant 0 : i32
    return %c0_i32, %c0_i32_0 : i32, i32
  }
  func.func @transform_11(%arg0: i32) -> (i32, i32) {
    %c0_i32 = arith.constant 0 : i32
    %c0_i32_0 = arith.constant 0 : i32
    %c0_i32_1 = arith.constant 0 : i32
    return %c0_i32, %c0_i32_0 : i32, i32
  }
  func.func @transform_12(%arg0: i32) -> (i32, i32) {
    %c0_i32 = arith.constant 0 : i32
    %c0_i32_0 = arith.constant 0 : i32
    %c0_i32_1 = arith.constant 0 : i32
    return %c0_i32, %c0_i32_0 : i32, i32
  }
  func.func @transform_13(%arg0: i32) -> (i32, i32) {
    %c0_i32 = arith.constant 0 : i32
    %c0_i32_0 = arith.constant 0 : i32
    return %arg0, %c0_i32 : i32, i32
  }
}

</mosaic_0001>

<bundles_post_ra>
// kernel: simple_mlp_forward.1
= control target key start
LH: loop header
LB: loop body
LE: loop exit
PB: predicated region body
PF: predicated region fallthrough
CT: control target
= control target key end

     0   :  { %18 = vsyncpa [#allocation3], 0  ;;  %s3401_s0 = inlined_call_operand.vmem [shape: bf16[128,16], index: 0, kind: input, shape index: {}]   ;;  %s3402_s1 = inlined_call_operand.vmem [shape: bf16[16,256], index: 1, kind: input, shape index: {}]   ;;  %s3403_s2 = inlined_call_operand.vmem [shape: f32[1,256], index: 2, kind: input, shape index: {}]   ;;  %s3404_s3 = inlined_call_operand.vmem [shape: bf16[256,256], index: 3, kind: input, shape index: {}]   ;;  %s3405_s4 = inlined_call_operand.vmem [shape: f32[1,256], index: 4, kind: input, shape index: {}]   ;;  %s3406_s5 = inlined_call_operand.hbm [shape: bf16[256,256], index: 5, kind: input, shape index: {}]   ;;  %s3407_s6 = inlined_call_operand.vmem [shape: f32[1,256], index: 6, kind: input, shape index: {}]   ;;  %s3408_s7 = inlined_call_operand.hbm [shape: bf16[256,256], index: 7, kind: input, shape index: {}]   ;;  %s3409_s8 = inlined_call_operand.vmem [shape: f32[1,256], index: 8, kind: input, shape index: {}]   ;;  %s3410_s9 = inlined_call_operand.hbm [shape: bf16[256,256], index: 9, kind: input, shape index: {}]   ;;  %s3411_s10 = inlined_call_operand.vmem [shape: f32[1,256], index: 10, kind: input, shape index: {}]   ;;  %s3412_s11 = inlined_call_operand.vmem [shape: bf16[256,8], index: 11, kind: input, shape index: {}]   ;;  %s3413_s12 = inlined_call_operand.vmem [shape: f32[1,8], index: 12, kind: input, shape index: {}]   ;;  %s3414_s13 = inlined_call_operand.vmem [shape: f32[128,8], index: 13, kind: output, shape index: {}]  }
   0x1   :  { %19 = vsyncpa [#allocation5], 0  ;;  %s2765_s25 = smov [#allocation4]   ;;  %s2766_s27 = smov [#allocation2]  }
   0x2   :  { %s49_s26 = sshll.u32 %s2765_s25, 4  ;;  %s35_s28 = sshll.u32 %s2766_s27, 4  ;;  %s50_s26 = int_to_ptr.vmem [resolvable:$true] %s49_s26  ;;  %s2841_s28 = int_to_ptr.vmem [resolvable:$true] %s35_s28 }
   0x3   :  { %s2695_s14 = scalar_lea.hbm %s3408_s7, 4096 }
   0x4   :  { %p2696_p0 = scmp.ne.s32.totalorder %s3408_s7, %s2695_s14  ;;  %p2699_p1 = scmp.lt.u32.totalorder %s2695_s14, %s3408_s7 }
   0x6   :  { %p2701_p2 = pnand %p2699_p1, %p2696_p0 }
   0x8   :  { %2704 = shalt.err (!%p2701_p2)
}
   0x9   :  { %s2705_s19 = scalar_lea.vmem %s50_s26, 4096  ;;  %p2710_p4 = scmp.lt.s32.totalorder %s50_s26, %s50_s26 }
   0xa   :  { %p2706_p3 = scmp.ne.s32.totalorder %s50_s26, %s2705_s19  ;;  %p2711_p5 = scmp.lt.s32.totalorder %s2705_s19, %s2705_s19 }
   0xc   :  { %p2712_p6 = por %p2711_p5, %p2710_p4 }
   0xe   :  { %p2713_p7 = pnand %p2712_p6, %p2706_p3 }
  0x10   :  { %2716 = shalt.err (!%p2713_p7)
}
  0x11   :  { %s2767_s20 = smov 128   ;;  %s2768_s21 = smov 8  }
  0x12   :  { %55 = dma.hbm_to_vmem [thread:$0]  %s3408_s7, 4096, %s50_s26, [#allocation5], %s2767_s20, %s2767_s20, %s2768_s21  }
  0x13   :  { %s2717_s27 = scalar_lea.hbm %s3406_s5, 4096 }
  0x14   :  { %p2718_p8 = scmp.ne.s32.totalorder %s3406_s5, %s2717_s27  ;;  %p2721_p9 = scmp.lt.u32.totalorder %s2717_s27, %s3406_s5 }
  0x16   :  { %p2723_p10 = pnand %p2721_p9, %p2718_p8 }
  0x18   :  { %2726 = shalt.err (!%p2723_p10)
}
  0x19   :  { %s2727_s16 = scalar_lea.vmem %s2841_s28, 4096  ;;  %p2732_p12 = scmp.lt.s32.totalorder %s2841_s28, %s2841_s28 }
  0x1a   :  { %p2728_p11 = scmp.ne.s32.totalorder %s2841_s28, %s2727_s16  ;;  %p2733_p13 = scmp.lt.s32.totalorder %s2727_s16, %s2727_s16 }
  0x1c   :  { %p2734_p0 = por %p2733_p13, %p2732_p12 }
  0x1e   :  { %p2735_p1 = pnand %p2734_p0, %p2728_p11 }
  0x20   :  { %2738 = shalt.err (!%p2735_p1)
}
  0x21   :  { %41 = dma.hbm_to_vmem [thread:$0]  %s3406_s5, 4096, %s2841_s28, [#allocation3], %s2767_s20, %s2767_s20, %s2768_s21  }
  0x22   :  { %s2769_s17 = smov [#allocation6]   ;;  %s2739_s23 = scalar_lea.hbm %s3410_s9, 4096 }
  0x23   :  { %s63_s18 = sshll.u32 %s2769_s17, 4  ;;  %p2740_p2 = scmp.ne.s32.totalorder %s3410_s9, %s2739_s23  ;;  %s64_s18 = int_to_ptr.vmem [resolvable:$true] %s63_s18 }
  0x24   :  { %p2743_p3 = scmp.lt.u32.totalorder %s2739_s23, %s3410_s9 }
  0x26   :  { %p2745_p4 = pnand %p2743_p3, %p2740_p2 }
  0x28   :  { %2748 = shalt.err (!%p2745_p4)
}
  0x29   :  { %s2749_s30 = scalar_lea.vmem %s64_s18, 4096  ;;  %p2754_p6 = scmp.lt.s32.totalorder %s64_s18, %s64_s18 }
  0x2a   :  { %p2750_p5 = scmp.ne.s32.totalorder %s64_s18, %s2749_s30  ;;  %p2755_p7 = scmp.lt.s32.totalorder %s2749_s30, %s2749_s30 }
  0x2c   :  { %p2756_p8 = por %p2755_p7, %p2754_p6 }
  0x2e   :  { %p2757_p9 = pnand %p2756_p8, %p2750_p5 }
  0x30   :  { %2760 = shalt.err (!%p2757_p9)
}
  0x31   :  { %69 = dma.hbm_to_vmem [thread:$0]  %s3410_s9, 4096, %s64_s18, [#allocation5], %s2767_s20, %s2767_s20, %s2768_s21  }
  0x32   :  { %2761 = dma.done.wait [#allocation3], 4096  }
  0x33   :  { %2762 = vsyncadd [#allocation3], 4294963200 }
  0x34   :  { %2763 = dma.done.wait [#allocation5], 8192  }
  0x35   :  { %2764 = vsyncadd [#allocation5], 4294959104  ;;  %v2770_v0 = vmov 0   ;;  %v2476_v1 = vld [vmem:[%s3402_s1 + $0x4] ss:$8 sps:$4 sm:$0xff]   ;;  %vm166_vm0 = vcmask 130048  }
  0x36   :  { %223 = vmatprep.mubr.bf16.mxu0 %v2770_v0  ;;  %v2478_v2 = vld [vmem:[%s3402_s1] ss:$8 sps:$4 sm:$0xff]   ;;  %191 = vmatprep.subr.bf16.mxu0 %v2476_v1  ;;  %v2487_v5 = vld [vmem:[%s3404_s3 + $0x4] ss:$8 sps:$4 sm:$0xff]   ;;  %v2490_v7 = vld [vmem:[%s3404_s3 + $0x14] ss:$8 sps:$4 sm:$0xff]  }
  0x37   :  { %v2479_v3 = vld [vmem:[%s3401_s0] sm:$0xff]   ;;  %192 = vmatpush1.bf16.msra.mxu0 %v2478_v2  ;;  %v2480_v4 = vld [vmem:[%s3401_s0 + $0x8] sm:$0xff]   ;;  %588 = vmatprep.subr.bf16.mxu1 %v2487_v5  ;;  %v2492_v8 = vld [vmem:[%s3404_s3 + $0x10] ss:$8 sps:$4 sm:$0xff]   ;;  %vm2204_vm1 = vcmask 64512  }
  0x38   :  { %v2489_v6 = vld [vmem:[%s3404_s3] ss:$8 sps:$4 sm:$0xff]   ;;  %v2493_v9 = vld [vmem:[%s3404_s3 + $0x24] ss:$8 sps:$4 sm:$0xff]   ;;  %v2481_v11 = vld [vmem:[%s3401_s0 + $0x10] sm:$0xff]  }
  0x39   :  { %589 = vmatpush1.bf16.msra.mxu1 %v2489_v6  ;;  %v2495_v10 = vld [vmem:[%s3404_s3 + $0x20] ss:$8 sps:$4 sm:$0xff]   ;;  %v2496_v12 = vld [vmem:[%s3404_s3 + $0x34] ss:$8 sps:$4 sm:$0xff]   ;;  %v2498_v13 = vld [vmem:[%s3404_s3 + $0x30] ss:$8 sps:$4 sm:$0xff]  }
  0x3a   :  { %2237 = vmatmul.mubr.msk.bf16.vlgmr.msra.gmra.mrb[0].mxu0 %vm166_vm0, %v2479_v3  ;;  %590 = vmatprep.subr.bf16.mxu1 %v2490_v7  ;;  %v2499_v14 = vld [vmem:[%s3404_s3 + $0x44] ss:$8 sps:$4 sm:$0xff]   ;;  %v2501_v15 = vld [vmem:[%s3404_s3 + $0x40] ss:$8 sps:$4 sm:$0xff]   ;;  %v2482_v16 = vld [vmem:[%s3401_s0 + $0x18] sm:$0xff]   ;;  %v106_v3 = vlaneseq }
  0x3b   :  { %233 = vmatprep.mubr.bf16.mxu0 %v2770_v0  ;;  %v2502_v17 = vld [vmem:[%s3404_s3 + $0x54] ss:$8 sps:$4 sm:$0xff]   ;;  %v2504_v18 = vld [vmem:[%s3404_s3 + $0x50] ss:$8 sps:$4 sm:$0xff]   ;;  %v2505_v19 = vld [vmem:[%s3404_s3 + $0x64] ss:$8 sps:$4 sm:$0xff]  }
  0x3c   :  { %v2507_v20 = vld [vmem:[%s3404_s3 + $0x60] ss:$8 sps:$4 sm:$0xff]   ;;  %v2508_v22 = vld [vmem:[%s3404_s3 + $0x74] ss:$8 sps:$4 sm:$0xff]   ;;  %v2510_v23 = vld [vmem:[%s3404_s3 + $0x70] ss:$8 sps:$4 sm:$0xff]  }
  0x3d   :  { %591 = vmatpush1.bf16.msra.mxu1 %v2492_v8  ;;  %v2483_v21 = vld [vmem:[%s3401_s0 + $0x20] sm:$0xff]   ;;  %v2484_v26 = vld [vmem:[%s3401_s0 + $0x28] sm:$0xff]   ;;  %v2514_v27 = vld [vmem:[%s3404_s3 + $0x94] ss:$8 sps:$4 sm:$0xff]   ;;  %v107_v6 = vshrl.u32 %v106_v3, 7 }
  0x3e   :  { %592 = vmatprep.subr.bf16.mxu1 %v2493_v9  ;;  %v2511_v24 = vld [vmem:[%s3404_s3 + $0x84] ss:$8 sps:$4 sm:$0xff]   ;;  %v2513_v25 = vld [vmem:[%s3404_s3 + $0x80] ss:$8 sps:$4 sm:$0xff]   ;;  %v2516_v28 = vld [vmem:[%s3404_s3 + $0x90] ss:$8 sps:$4 sm:$0xff]  }
  0x3f   :  { %v2517_v29 = vld [vmem:[%s3404_s3 + $0xa4] ss:$8 sps:$4 sm:$0xff]   ;;  %v2519_v30 = vld [vmem:[%s3404_s3 + $0xa0] ss:$8 sps:$4 sm:$0xff]   ;;  %v2485_v31 = vld [vmem:[%s3401_s0 + $0x30] sm:$0xff]   ;;  %v3035_v7 = vsub.s32 0, %v107_v6 }
  0x40   :  { %v2520_v32 = vld [vmem:[%s3404_s3 + $0xb4] ss:$8 sps:$4 sm:$0xff]   ;;  %v2522_v33 = vld [vmem:[%s3404_s3 + $0xb0] ss:$8 sps:$4 sm:$0xff]   ;;  %v2523_v34 = vld [vmem:[%s3404_s3 + $0xc4] ss:$8 sps:$4 sm:$0xff]  }
  0x41   :  { %593 = vmatpush1.bf16.msra.mxu1 %v2495_v10  ;;  %v2525_v35 = vld [vmem:[%s3404_s3 + $0xc0] ss:$8 sps:$4 sm:$0xff]   ;;  %v2486_v36 = vld [vmem:[%s3401_s0 + $0x38] sm:$0xff]   ;;  %v2529_v39 = vld [vmem:[%s3404_s3 + $0xe4] ss:$8 sps:$4 sm:$0xff]   ;;  %v3040_v9 = vsub.s32 1, %v107_v6 }
  0x42   :  { %2238 = vmatmul.mubr.msk.bf16.gmra.mrb[4].mxu0 %vm166_vm0, %v2480_v4  ;;  %594 = vmatprep.subr.bf16.mxu1 %v2496_v12  ;;  %v2526_v37 = vld [vmem:[%s3404_s3 + $0xd4] ss:$8 sps:$4 sm:$0xff]   ;;  %v2528_v38 = vld [vmem:[%s3404_s3 + $0xd0] ss:$8 sps:$4 sm:$0xff]   ;;  %v2531_v40 = vld [vmem:[%s3404_s3 + $0xe0] ss:$8 sps:$4 sm:$0xff]  }
  0x43   :  { %243 = vmatprep.mubr.bf16.mxu0 %v2770_v0  ;;  %v2532_v41 = vld [vmem:[%s3404_s3 + $0xf4] ss:$8 sps:$4 sm:$0xff]   ;;  %v2534_v42 = vld [vmem:[%s3404_s3 + $0xf0] ss:$8 sps:$4 sm:$0xff]   ;;  %v2535_v43 = vld [vmem:[#allocation2] ss:$8 sps:$4 sm:$0xff]  }
  0x44   :  { %v2537_v44 = vld [vmem:[#allocation2 + $0x4] ss:$8 sps:$4 sm:$0xff]   ;;  %v2540_v45 = vld [vmem:[#allocation2 + $0x14] ss:$8 sps:$4 sm:$0xff]   ;;  %v2538_v46 = vld [vmem:[#allocation2 + $0x10] ss:$8 sps:$4 sm:$0xff]  }
  0x45   :  { %595 = vmatpush1.bf16.msra.mxu1 %v2498_v13  ;;  %985 = vmatprep.subr.bf16.mxu0 %v2537_v44  ;;  %v2543_v47 = vld [vmem:[#allocation2 + $0x24] ss:$8 sps:$4 sm:$0xff]   ;;  %v2541_v48 = vld [vmem:[#allocation2 + $0x20] ss:$8 sps:$4 sm:$0xff]   ;;  %v2546_v49 = vld [vmem:[#allocation2 + $0x34] ss:$8 sps:$4 sm:$0xff]  }
  0x46   :  { %596 = vmatprep.subr.bf16.mxu1 %v2499_v14  ;;  %986 = vmatpush1.bf16.msra.mxu0 %v2535_v43  ;;  %v2544_v50 = vld [vmem:[#allocation2 + $0x30] ss:$8 sps:$4 sm:$0xff]   ;;  %v2549_v51 = vld [vmem:[#allocation2 + $0x44] ss:$8 sps:$4 sm:$0xff]   ;;  %v2547_v52 = vld [vmem:[#allocation2 + $0x40] ss:$8 sps:$4 sm:$0xff]  }
  0x47   :  { %987 = vmatprep.subr.bf16.mxu0 %v2540_v45  ;;  %v2552_v53 = vld [vmem:[#allocation2 + $0x54] ss:$8 sps:$4 sm:$0xff]   ;;  %v2550_v54 = vld [vmem:[#allocation2 + $0x50] ss:$8 sps:$4 sm:$0xff]   ;;  %v2555_v55 = vld [vmem:[#allocation2 + $0x64] ss:$8 sps:$4 sm:$0xff]  }
  0x48   :  { %v2553_v56 = vld [vmem:[#allocation2 + $0x60] ss:$8 sps:$4 sm:$0xff]   ;;  %v2558_v57 = vld [vmem:[#allocation2 + $0x74] ss:$8 sps:$4 sm:$0xff]   ;;  %v2556_v58 = vld [vmem:[#allocation2 + $0x70] ss:$8 sps:$4 sm:$0xff]  }
  0x49   :  { %597 = vmatpush1.bf16.msra.mxu1 %v2501_v15  ;;  %v2561_v59 = vld [vmem:[#allocation2 + $0x84] ss:$8 sps:$4 sm:$0xff]   ;;  %v2559_v60 = vld [vmem:[#allocation2 + $0x80] ss:$8 sps:$4 sm:$0xff]   ;;  %v2564_v61 = vld [vmem:[#allocation2 + $0x94] ss:$8 sps:$4 sm:$0xff]  }
  0x4a   :  { %2239 = vmatmul.mubr.msk.bf16.gmra.mrb[8].mxu0 %vm166_vm0, %v2481_v11  ;;  %598 = vmatprep.subr.bf16.mxu1 %v2502_v17  ;;  %v2562_v62 = vld [vmem:[#allocation2 + $0x90] ss:$8 sps:$4 sm:$0xff]   ;;  %v2567_v63 = vld [vmem:[#allocation2 + $0xa4] ss:$8 sps:$4 sm:$0xff]   ;;  %v2570_v1 = vld [vmem:[#allocation2 + $0xb4] ss:$8 sps:$4 sm:$0xff]  }
  0x4b   :  { %253 = vmatprep.mubr.bf16.mxu0 %v2770_v0  ;;  %988 = vmatpush1.bf16.msra.mxu0 %v2538_v46  ;;  %v2568_v2 = vld [vmem:[#allocation2 + $0xb0] ss:$8 sps:$4 sm:$0xff]   ;;  %v2573_v4 = vld [vmem:[#allocation2 + $0xc4] ss:$8 sps:$4 sm:$0xff]   ;;  %v2571_v5 = vld [vmem:[#allocation2 + $0xc0] ss:$8 sps:$4 sm:$0xff]  }
  0x4c   :  { %989 = vmatprep.subr.bf16.mxu0 %v2543_v47  ;;  %v104_v8 = vld [vmem:[%s3403_s2] sm:$0x3] }
  0x4d   :  { %599 = vmatpush1.bf16.msra.mxu1 %v2504_v18  ;;  %v3043_v10 = vrot.slane %v104_v8, %v3035_v7  ;;  %v3046_v11 = vrot.slane %v104_v8, %v3040_v9 }
  0x4e   :  { %600 = vmatprep.subr.bf16.mxu1 %v2505_v19 }
  0x4f   :  { %990 = vmatpush1.bf16.msra.mxu0 %v2541_v48 }
  0x50   :  { %991 = vmatprep.subr.bf16.mxu0 %v2546_v49 }
  0x51   :  { %601 = vmatpush1.bf16.msra.mxu1 %v2507_v20 }
  0x52   :  { %2240 = vmatmul.mubr.msk.bf16.gmra.mrb[12].mxu0 %vm166_vm0, %v2482_v16  ;;  %602 = vmatprep.subr.bf16.mxu1 %v2508_v22 }
  0x53   :  { %263 = vmatprep.mubr.bf16.mxu0 %v2770_v0  ;;  %992 = vmatpush1.bf16.msra.mxu0 %v2544_v50 }
  0x54   :  { %993 = vmatprep.subr.bf16.mxu0 %v2549_v51 }
  0x55   :  { %603 = vmatpush1.bf16.msra.mxu1 %v2510_v23 }
  0x56   :  { %604 = vmatprep.subr.bf16.mxu1 %v2511_v24 }
  0x57   :  { %994 = vmatpush1.bf16.msra.mxu0 %v2547_v52 }
  0x58   :  { %995 = vmatprep.subr.bf16.mxu0 %v2552_v53 }
  0x59   :  { %605 = vmatpush1.bf16.msra.mxu1 %v2513_v25 }
  0x5a   :  { %2241 = vmatmul.mubr.msk.bf16.gmra.mrb[16].mxu0 %vm166_vm0, %v2483_v21  ;;  %606 = vmatprep.subr.bf16.mxu1 %v2514_v27 }
  0x5b   :  { %273 = vmatprep.mubr.bf16.mxu0 %v2770_v0  ;;  %996 = vmatpush1.bf16.msra.mxu0 %v2550_v54 }
  0x5c   :  { %997 = vmatprep.subr.bf16.mxu0 %v2555_v55 }
  0x5d   :  { %607 = vmatpush1.bf16.msra.mxu1 %v2516_v28 }
  0x5e   :  { %608 = vmatprep.subr.bf16.mxu1 %v2517_v29 }
  0x5f   :  { %998 = vmatpush1.bf16.msra.mxu0 %v2553_v56 }
  0x60   :  { %999 = vmatprep.subr.bf16.mxu0 %v2558_v57 }
  0x61   :  { %609 = vmatpush1.bf16.msra.mxu1 %v2519_v30 }
  0x62   :  { %2242 = vmatmul.mubr.msk.bf16.gmra.mrb[20].mxu0 %vm166_vm0, %v2484_v26  ;;  %610 = vmatprep.subr.bf16.mxu1 %v2520_v32 }
  0x63   :  { %283 = vmatprep.mubr.bf16.mxu0 %v2770_v0  ;;  %1000 = vmatpush1.bf16.msra.mxu0 %v2556_v58 }
  0x64   :  { %1001 = vmatprep.subr.bf16.mxu0 %v2561_v59 }
  0x65   :  { %611 = vmatpush1.bf16.msra.mxu1 %v2522_v33 }
  0x66   :  { %612 = vmatprep.subr.bf16.mxu1 %v2523_v34 }
  0x67   :  { %1002 = vmatpush1.bf16.msra.mxu0 %v2559_v60 }
  0x68   :  { %1003 = vmatprep.subr.bf16.mxu0 %v2564_v61 }
  0x69   :  { %613 = vmatpush1.bf16.msra.mxu1 %v2525_v35 }
  0x6a   :  { %2243 = vmatmul.mubr.msk.bf16.gmra.mrb[24].mxu0 %vm166_vm0, %v2485_v31  ;;  %614 = vmatprep.subr.bf16.mxu1 %v2526_v37 }
  0x6b   :  { %293 = vmatprep.mubr.bf16.mxu0 %v2770_v0  ;;  %1004 = vmatpush1.bf16.msra.mxu0 %v2562_v62  ;;  %v2565_v0 = vld [vmem:[#allocation2 + $0xa0] ss:$8 sps:$4 sm:$0xff]  }
  0x6c   :  { %1005 = vmatprep.subr.bf16.mxu0 %v2567_v63 }
  0x6d   :  { %615 = vmatpush1.bf16.msra.mxu1 %v2528_v38 }
  0x6e   :  { %616 = vmatprep.subr.bf16.mxu1 %v2529_v39 }
  0x6f   :  { %1006 = vmatpush1.bf16.msra.mxu0 %v2565_v0 }
  0x70   :  { %1007 = vmatprep.subr.bf16.mxu0 %v2570_v1 }
  0x71   :  { %617 = vmatpush1.bf16.msra.mxu1 %v2531_v40 }
  0x72   :  { %2244 = vmatmul.mubr.msk.bf16.gmra.mrb[28].mxu0 %vm166_vm0, %v2486_v36  ;;  %618 = vmatprep.subr.bf16.mxu1 %v2532_v41 }
  0x73   :  { %1008 = vmatpush1.bf16.msra.mxu0 %v2568_v2 }
  0x74   :  { %1009 = vmatprep.subr.bf16.mxu0 %v2573_v4 }
  0x75   :  { %619 = vmatpush1.bf16.msra.mxu1 %v2534_v42 }
  0x77   :  { %1010 = vmatpush1.bf16.msra.mxu0 %v2571_v5 }
 0x10d   :  { %v225_v12 = vpop.f32.mrb[0].mxu0 }
 0x10e   :  { %v226_v13 = vadd.f32 %v225_v12, %v3043_v10  ;;  %v227_v14 = vpop.f32.mrb[1].mxu0 }
 0x10f   :  { %v228_v15 = vadd.f32 %v227_v14, %v3046_v11  ;;  %v229_v16 = vpop.f32.mrb[2].mxu0 }
 0x110   :  { %v304_v17 = vmul.f32 0.01, %v226_v13  ;;  %v230_v18 = vadd.f32 %v229_v16, %v3043_v10  ;;  %v231_v19 = vpop.f32.mrb[3].mxu0 }
 0x111   :  { %v305_v20 = vmul.f32 0.01, %v228_v15  ;;  %v232_v21 = vadd.f32 %v231_v19, %v3046_v11 }
 0x112   :  { %v306_v22 = vmul.f32 0.01, %v230_v18  ;;  %v336_v24 = vmax.f32 %v226_v13, %v304_v17 }
 0x113   :  { %v307_v23 = vmul.f32 0.01, %v232_v21  ;;  %v337_v27 = vmax.f32 %v228_v15, %v305_v20 }
 0x114   :  { %v338_v25 = vmax.f32 %v230_v18, %v306_v22 }
 0x115   :  { %v235_v26 = vpop.f32.mrb[4].mxu0  ;;  %v339_v28 = vmax.f32 %v232_v21, %v307_v23 }
 0x116   :  { %v236_v29 = vadd.f32 %v235_v26, %v3043_v10  ;;  %v237_v30 = vpop.f32.mrb[5].mxu0  ;;  %v368_v31 = vpack.c.bf16 %v338_v25, %v336_v24 }
 0x117   :  { %v238_v32 = vadd.f32 %v237_v30, %v3046_v11  ;;  %v239_v33 = vpop.f32.mrb[6].mxu0  ;;  %v369_v34 = vpack.c.bf16 %v339_v28, %v337_v27 }
 0x118   :  { %v308_v35 = vmul.f32 0.01, %v236_v29  ;;  %v240_v36 = vadd.f32 %v239_v33, %v3043_v10  ;;  %v241_v37 = vpop.f32.mrb[7].mxu0 }
 0x119   :  { %v309_v38 = vmul.f32 0.01, %v238_v32  ;;  %v242_v39 = vadd.f32 %v241_v37, %v3046_v11  ;;  %620 = vmatprep.mubr.bf16.mxu1 %v369_v34 }
 0x11a   :  { %v310_v40 = vmul.f32 0.01, %v240_v36  ;;  %621 = vmatmul.mubr.bf16.vlgmr.msra.gmra.mrb[0].mxu1 %v368_v31  ;;  %v340_v42 = vmax.f32 %v236_v29, %v308_v35 }
 0x11b   :  { %v311_v41 = vmul.f32 0.01, %v242_v39  ;;  %v341_v44 = vmax.f32 %v238_v32, %v309_v38 }
 0x11c   :  { %v342_v43 = vmax.f32 %v240_v36, %v310_v40 }
 0x11d   :  { %v343_v45 = vmax.f32 %v242_v39, %v311_v41  ;;  %v245_v46 = vpop.f32.mrb[8].mxu0 }
 0x11e   :  { %v246_v47 = vadd.f32 %v245_v46, %v3043_v10  ;;  %v247_v48 = vpop.f32.mrb[9].mxu0  ;;  %v370_v49 = vpack.c.bf16 %v342_v43, %v340_v42 }
 0x11f   :  { %v248_v50 = vadd.f32 %v247_v48, %v3046_v11  ;;  %v249_v51 = vpop.f32.mrb[10].mxu0  ;;  %v371_v52 = vpack.c.bf16 %v343_v45, %v341_v44 }
 0x120   :  { %v312_v53 = vmul.f32 0.01, %v246_v47  ;;  %v250_v54 = vadd.f32 %v249_v51, %v3043_v10  ;;  %v251_v55 = vpop.f32.mrb[11].mxu0 }
 0x121   :  { %v313_v56 = vmul.f32 0.01, %v248_v50  ;;  %v252_v57 = vadd.f32 %v251_v55, %v3046_v11  ;;  %630 = vmatprep.mubr.bf16.mxu1 %v371_v52 }
 0x122   :  { %v314_v58 = vmul.f32 0.01, %v250_v54  ;;  %631 = vmatmul.mubr.bf16.gmra.mrb[4].mxu1 %v370_v49  ;;  %v344_v60 = vmax.f32 %v246_v47, %v312_v53 }
 0x123   :  { %v315_v59 = vmul.f32 0.01, %v252_v57  ;;  %v345_v62 = vmax.f32 %v248_v50, %v313_v56 }
 0x124   :  { %v346_v61 = vmax.f32 %v250_v54, %v314_v58 }
 0x125   :  { %v347_v63 = vmax.f32 %v252_v57, %v315_v59  ;;  %v255_v0 = vpop.f32.mrb[12].mxu0 }
 0x126   :  { %v256_v1 = vadd.f32 %v255_v0, %v3043_v10  ;;  %v257_v2 = vpop.f32.mrb[13].mxu0  ;;  %v372_v3 = vpack.c.bf16 %v346_v61, %v344_v60 }
 0x127   :  { %v258_v4 = vadd.f32 %v257_v2, %v3046_v11  ;;  %v259_v5 = vpop.f32.mrb[14].mxu0  ;;  %v373_v6 = vpack.c.bf16 %v347_v63, %v345_v62 }
 0x128   :  { %v316_v8 = vmul.f32 0.01, %v256_v1  ;;  %v260_v12 = vadd.f32 %v259_v5, %v3043_v10  ;;  %v261_v13 = vpop.f32.mrb[15].mxu0 }
 0x129   :  { %v317_v14 = vmul.f32 0.01, %v258_v4  ;;  %v262_v15 = vadd.f32 %v261_v13, %v3046_v11  ;;  %640 = vmatprep.mubr.bf16.mxu1 %v373_v6 }
 0x12a   :  { %v318_v16 = vmul.f32 0.01, %v260_v12  ;;  %641 = vmatmul.mubr.bf16.gmra.mrb[8].mxu1 %v372_v3  ;;  %v348_v18 = vmax.f32 %v256_v1, %v316_v8 }
 0x12b   :  { %v319_v17 = vmul.f32 0.01, %v262_v15  ;;  %v349_v20 = vmax.f32 %v258_v4, %v317_v14 }
 0x12c   :  { %v350_v19 = vmax.f32 %v260_v12, %v318_v16 }
 0x12d   :  { %v351_v21 = vmax.f32 %v262_v15, %v319_v17  ;;  %v265_v22 = vpop.f32.mrb[16].mxu0 }
 0x12e   :  { %v266_v23 = vadd.f32 %v265_v22, %v3043_v10  ;;  %v267_v24 = vpop.f32.mrb[17].mxu0  ;;  %v374_v25 = vpack.c.bf16 %v350_v19, %v348_v18 }
 0x12f   :  { %v268_v26 = vadd.f32 %v267_v24, %v3046_v11  ;;  %v269_v27 = vpop.f32.mrb[18].mxu0  ;;  %v375_v28 = vpack.c.bf16 %v351_v21, %v349_v20 }
 0x130   :  { %v320_v29 = vmul.f32 0.01, %v266_v23  ;;  %v270_v30 = vadd.f32 %v269_v27, %v3043_v10  ;;  %v271_v31 = vpop.f32.mrb[19].mxu0 }
 0x131   :  { %v321_v32 = vmul.f32 0.01, %v268_v26  ;;  %v272_v33 = vadd.f32 %v271_v31, %v3046_v11  ;;  %650 = vmatprep.mubr.bf16.mxu1 %v375_v28 }
 0x132   :  { %v322_v34 = vmul.f32 0.01, %v270_v30  ;;  %651 = vmatmul.mubr.bf16.gmra.mrb[12].mxu1 %v374_v25  ;;  %v352_v36 = vmax.f32 %v266_v23, %v320_v29 }
 0x133   :  { %v323_v35 = vmul.f32 0.01, %v272_v33  ;;  %v353_v38 = vmax.f32 %v268_v26, %v321_v32 }
 0x134   :  { %v354_v37 = vmax.f32 %v270_v30, %v322_v34 }
 0x135   :  { %v355_v39 = vmax.f32 %v272_v33, %v323_v35  ;;  %v275_v40 = vpop.f32.mrb[20].mxu0 }
 0x136   :  { %v276_v41 = vadd.f32 %v275_v40, %v3043_v10  ;;  %v277_v42 = vpop.f32.mrb[21].mxu0  ;;  %v376_v43 = vpack.c.bf16 %v354_v37, %v352_v36  ;;  %v2576_v36 = vld [vmem:[#allocation2 + $0xd4] ss:$8 sps:$4 sm:$0xff]   ;;  %v2574_v37 = vld [vmem:[#allocation2 + $0xd0] ss:$8 sps:$4 sm:$0xff]  }
 0x137   :  { %v278_v44 = vadd.f32 %v277_v42, %v3046_v11  ;;  %v279_v45 = vpop.f32.mrb[22].mxu0  ;;  %v377_v46 = vpack.c.bf16 %v355_v39, %v353_v38  ;;  %1011 = vmatprep.subr.bf16.mxu0 %v2576_v36  ;;  %v2577_v38 = vld [vmem:[#allocation2 + $0xe0] ss:$8 sps:$4 sm:$0xff]   ;;  %v2580_v39 = vld [vmem:[#allocation2 + $0xf0] ss:$8 sps:$4 sm:$0xff]  }
 0x138   :  { %v324_v47 = vmul.f32 0.01, %v276_v41  ;;  %v280_v48 = vadd.f32 %v279_v45, %v3043_v10  ;;  %v281_v49 = vpop.f32.mrb[23].mxu0  ;;  %1012 = vmatpush1.bf16.msra.mxu0 %v2574_v37  ;;  %v2583_v40 = vld [vmem:[#allocation4] ss:$8 sps:$4 sm:$0xff]  }
 0x139   :  { %v325_v50 = vmul.f32 0.01, %v278_v44  ;;  %v282_v51 = vadd.f32 %v281_v49, %v3046_v11  ;;  %660 = vmatprep.mubr.bf16.mxu1 %v377_v46  ;;  %v2588_v42 = vld [vmem:[#allocation4 + $0x14] ss:$8 sps:$4 sm:$0xff]   ;;  %v2589_v45 = vld [vmem:[#allocation4 + $0x20] ss:$8 sps:$4 sm:$0xff]  }
 0x13a   :  { %v326_v52 = vmul.f32 0.01, %v280_v48  ;;  %661 = vmatmul.mubr.bf16.gmra.mrb[16].mxu1 %v376_v43  ;;  %v356_v54 = vmax.f32 %v276_v41, %v324_v47  ;;  %v2585_v41 = vld [vmem:[#allocation4 + $0x4] ss:$8 sps:$4 sm:$0xff]   ;;  %v2586_v43 = vld [vmem:[#allocation4 + $0x10] ss:$8 sps:$4 sm:$0xff]  }
 0x13b   :  { %v327_v53 = vmul.f32 0.01, %v282_v51  ;;  %v357_v56 = vmax.f32 %v278_v44, %v325_v50  ;;  %1382 = vmatprep.subr.bf16.mxu1 %v2585_v41  ;;  %v2591_v44 = vld [vmem:[#allocation4 + $0x24] ss:$8 sps:$4 sm:$0xff]   ;;  %v2594_v46 = vld [vmem:[#allocation4 + $0x34] ss:$8 sps:$4 sm:$0xff]  }
 0x13c   :  { %v358_v55 = vmax.f32 %v280_v48, %v326_v52  ;;  %1383 = vmatpush1.bf16.msra.mxu1 %v2583_v40  ;;  %v2592_v47 = vld [vmem:[#allocation4 + $0x30] ss:$8 sps:$4 sm:$0xff]   ;;  %v2597_v48 = vld [vmem:[#allocation4 + $0x44] ss:$8 sps:$4 sm:$0xff]   ;;  %v2595_v49 = vld [vmem:[#allocation4 + $0x40] ss:$8 sps:$4 sm:$0xff]  }
 0x13d   :  { %v359_v57 = vmax.f32 %v282_v51, %v327_v53  ;;  %v285_v58 = vpop.f32.mrb[24].mxu0  ;;  %1384 = vmatprep.subr.bf16.mxu1 %v2588_v42  ;;  %v2600_v50 = vld [vmem:[#allocation4 + $0x54] ss:$8 sps:$4 sm:$0xff]   ;;  %v2598_v51 = vld [vmem:[#allocation4 + $0x50] ss:$8 sps:$4 sm:$0xff]  }
 0x13e   :  { %v286_v59 = vadd.f32 %v285_v58, %v3043_v10  ;;  %v287_v60 = vpop.f32.mrb[25].mxu0  ;;  %v378_v61 = vpack.c.bf16 %v358_v55, %v356_v54  ;;  %v2603_v52 = vld [vmem:[#allocation4 + $0x64] ss:$8 sps:$4 sm:$0xff]   ;;  %v2601_v53 = vld [vmem:[#allocation4 + $0x60] ss:$8 sps:$4 sm:$0xff]  }
 0x13f   :  { %v288_v62 = vadd.f32 %v287_v60, %v3046_v11  ;;  %v289_v63 = vpop.f32.mrb[26].mxu0  ;;  %v379_v0 = vpack.c.bf16 %v359_v57, %v357_v56  ;;  %v2606_v54 = vld [vmem:[#allocation4 + $0x74] ss:$8 sps:$4 sm:$0xff]   ;;  %v2604_v55 = vld [vmem:[#allocation4 + $0x70] ss:$8 sps:$4 sm:$0xff]  }
 0x140   :  { %v328_v1 = vmul.f32 0.01, %v286_v59  ;;  %v290_v2 = vadd.f32 %v289_v63, %v3043_v10  ;;  %v291_v3 = vpop.f32.mrb[27].mxu0  ;;  %1385 = vmatpush1.bf16.msra.mxu1 %v2586_v43  ;;  %v2609_v56 = vld [vmem:[#allocation4 + $0x84] ss:$8 sps:$4 sm:$0xff]  }
 0x141   :  { %v329_v4 = vmul.f32 0.01, %v288_v62  ;;  %v292_v5 = vadd.f32 %v291_v3, %v3046_v11  ;;  %670 = vmatprep.mubr.bf16.mxu1 %v379_v0  ;;  %1386 = vmatprep.subr.bf16.mxu1 %v2591_v44  ;;  %v2607_v57 = vld [vmem:[#allocation4 + $0x80] ss:$8 sps:$4 sm:$0xff]   ;;  %v2612_v58 = vld [vmem:[#allocation4 + $0x94] ss:$8 sps:$4 sm:$0xff]  }
 0x142   :  { %v330_v6 = vmul.f32 0.01, %v290_v2  ;;  %671 = vmatmul.mubr.bf16.gmra.mrb[20].mxu1 %v378_v61  ;;  %v360_v12 = vmax.f32 %v286_v59, %v328_v1  ;;  %v2610_v59 = vld [vmem:[#allocation4 + $0x90] ss:$8 sps:$4 sm:$0xff]   ;;  %v2615_v60 = vld [vmem:[#allocation4 + $0xa4] ss:$8 sps:$4 sm:$0xff]  }
 0x143   :  { %v331_v8 = vmul.f32 0.01, %v292_v5  ;;  %v361_v14 = vmax.f32 %v288_v62, %v329_v4  ;;  %v2613_v61 = vld [vmem:[#allocation4 + $0xa0] ss:$8 sps:$4 sm:$0xff]   ;;  %v2618_v62 = vld [vmem:[#allocation4 + $0xb4] ss:$8 sps:$4 sm:$0xff]  }
 0x144   :  { %v362_v13 = vmax.f32 %v290_v2, %v330_v6  ;;  %1387 = vmatpush1.bf16.msra.mxu1 %v2589_v45  ;;  %v2616_v63 = vld [vmem:[#allocation4 + $0xb0] ss:$8 sps:$4 sm:$0xff]   ;;  %v2621_v0 = vld [vmem:[#allocation4 + $0xc4] ss:$8 sps:$4 sm:$0xff]   ;;  %v2619_v1 = vld [vmem:[#allocation4 + $0xc0] ss:$8 sps:$4 sm:$0xff]  }
 0x145   :  { %v363_v15 = vmax.f32 %v292_v5, %v331_v8  ;;  %v295_v16 = vpop.f32.mrb[28].mxu0  ;;  %1388 = vmatprep.subr.bf16.mxu1 %v2594_v46  ;;  %v416_v2 = vld [vmem:[%s3405_s4] sm:$0x3] }
 0x146   :  { %v296_v17 = vadd.f32 %v295_v16, %v3043_v10  ;;  %v297_v18 = vpop.f32.mrb[29].mxu0  ;;  %v380_v19 = vpack.c.bf16 %v362_v13, %v360_v12  ;;  %v3084_v3 = vrot.slane %v416_v2, %v3035_v7  ;;  %v3087_v4 = vrot.slane %v416_v2, %v3040_v9 }
 0x147   :  { %v298_v20 = vadd.f32 %v297_v18, %v3046_v11  ;;  %v299_v21 = vpop.f32.mrb[30].mxu0  ;;  %v381_v22 = vpack.c.bf16 %v363_v15, %v361_v14 }
 0x148   :  { %v332_v23 = vmul.f32 0.01, %v296_v17  ;;  %v300_v24 = vadd.f32 %v299_v21, %v3043_v10  ;;  %v301_v25 = vpop.f32.mrb[31].mxu0  ;;  %v2579_v10 = vld [vmem:[#allocation2 + $0xe4] ss:$8 sps:$4 sm:$0xff]   ;;  %1389 = vmatpush1.bf16.msra.mxu1 %v2592_v47 }
 0x149   :  { %v333_v26 = vmul.f32 0.01, %v298_v20  ;;  %v302_v27 = vadd.f32 %v301_v25, %v3046_v11  ;;  %680 = vmatprep.mubr.bf16.mxu1 %v381_v22  ;;  %1013 = vmatprep.subr.bf16.mxu0 %v2579_v10  ;;  %v2582_v11 = vld [vmem:[#allocation2 + $0xf4] ss:$8 sps:$4 sm:$0xff]  }
 0x14a   :  { %v334_v28 = vmul.f32 0.01, %v300_v24  ;;  %681 = vmatmul.mubr.bf16.gmra.mrb[24].mxu1 %v380_v19  ;;  %v364_v30 = vmax.f32 %v296_v17, %v332_v23  ;;  %1014 = vmatpush1.bf16.msra.mxu0 %v2577_v38 }
 0x14b   :  { %v335_v29 = vmul.f32 0.01, %v302_v27  ;;  %v365_v32 = vmax.f32 %v298_v20, %v333_v26  ;;  %1015 = vmatprep.subr.bf16.mxu0 %v2582_v11  ;;  %1390 = vmatprep.subr.bf16.mxu1 %v2597_v48 }
 0x14c   :  { %v366_v31 = vmax.f32 %v300_v24, %v334_v28  ;;  %1391 = vmatpush1.bf16.msra.mxu1 %v2595_v49 }
 0x14d   :  { %v367_v33 = vmax.f32 %v302_v27, %v335_v29  ;;  %1392 = vmatprep.subr.bf16.mxu1 %v2600_v50 }
 0x14e   :  { %v382_v34 = vpack.c.bf16 %v366_v31, %v364_v30  ;;  %1016 = vmatpush1.bf16.msra.mxu0 %v2580_v39 }
 0x14f   :  { %v383_v35 = vpack.c.bf16 %v367_v33, %v365_v32 }
 0x150   :  { %1393 = vmatpush1.bf16.msra.mxu1 %v2598_v51 }
 0x151   :  { %690 = vmatprep.mubr.bf16.mxu1 %v383_v35  ;;  %1394 = vmatprep.subr.bf16.mxu1 %v2603_v52 }
 0x152   :  { %691 = vmatmul.mubr.bf16.gmra.mrb[28].mxu1 %v382_v34 }
 0x154   :  { %1395 = vmatpush1.bf16.msra.mxu1 %v2601_v53 }
 0x155   :  { %1396 = vmatprep.subr.bf16.mxu1 %v2606_v54 }
 0x158   :  { %1397 = vmatpush1.bf16.msra.mxu1 %v2604_v55 }
 0x159   :  { %1398 = vmatprep.subr.bf16.mxu1 %v2609_v56 }
 0x15c   :  { %1399 = vmatpush1.bf16.msra.mxu1 %v2607_v57 }
 0x15d   :  { %1400 = vmatprep.subr.bf16.mxu1 %v2612_v58 }
 0x160   :  { %1401 = vmatpush1.bf16.msra.mxu1 %v2610_v59 }
 0x161   :  { %1402 = vmatprep.subr.bf16.mxu1 %v2615_v60 }
 0x164   :  { %1403 = vmatpush1.bf16.msra.mxu1 %v2613_v61 }
 0x165   :  { %1404 = vmatprep.subr.bf16.mxu1 %v2618_v62 }
 0x168   :  { %1405 = vmatpush1.bf16.msra.mxu1 %v2616_v63 }
 0x169   :  { %1406 = vmatprep.subr.bf16.mxu1 %v2621_v0 }
 0x16c   :  { %1407 = vmatpush1.bf16.msra.mxu1 %v2619_v1 }
 0x1ed   :  { %v622_v5 = vpop.f32.mrb[0].mxu1 }
 0x1ee   :  { %v623_v6 = vadd.f32 %v622_v5, %v3084_v3  ;;  %v624_v8 = vpop.f32.mrb[1].mxu1 }
 0x1ef   :  { %v625_v12 = vadd.f32 %v624_v8, %v3087_v4  ;;  %v626_v13 = vpop.f32.mrb[2].mxu1 }
 0x1f0   :  { %v701_v14 = vmul.f32 0.01, %v623_v6  ;;  %v627_v15 = vadd.f32 %v626_v13, %v3084_v3  ;;  %v628_v16 = vpop.f32.mrb[3].mxu1 }
 0x1f1   :  { %v702_v17 = vmul.f32 0.01, %v625_v12  ;;  %v629_v18 = vadd.f32 %v628_v16, %v3087_v4 }
 0x1f2   :  { %v703_v19 = vmul.f32 0.01, %v627_v15  ;;  %v733_v21 = vmax.f32 %v623_v6, %v701_v14 }
 0x1f3   :  { %v704_v20 = vmul.f32 0.01, %v629_v18  ;;  %v734_v23 = vmax.f32 %v625_v12, %v702_v17 }
 0x1f4   :  { %v735_v22 = vmax.f32 %v627_v15, %v703_v19 }
 0x1f5   :  { %v736_v24 = vmax.f32 %v629_v18, %v704_v20  ;;  %v632_v25 = vpop.f32.mrb[4].mxu1 }
 0x1f6   :  { %v765_v26 = vpack.c.bf16 %v735_v22, %v733_v21  ;;  %v633_v27 = vadd.f32 %v632_v25, %v3084_v3  ;;  %v634_v28 = vpop.f32.mrb[5].mxu1 }
 0x1f7   :  { %v635_v29 = vadd.f32 %v634_v28, %v3087_v4  ;;  %v636_v30 = vpop.f32.mrb[6].mxu1  ;;  %v766_v31 = vpack.c.bf16 %v736_v24, %v734_v23 }
 0x1f8   :  { %v705_v32 = vmul.f32 0.01, %v633_v27  ;;  %v637_v33 = vadd.f32 %v636_v30, %v3084_v3  ;;  %v638_v34 = vpop.f32.mrb[7].mxu1 }
 0x1f9   :  { %v706_v35 = vmul.f32 0.01, %v635_v29  ;;  %v639_v36 = vadd.f32 %v638_v34, %v3087_v4  ;;  %1017 = vmatprep.mubr.bf16.mxu0 %v766_v31 }
 0x1fa   :  { %v707_v37 = vmul.f32 0.01, %v637_v33  ;;  %1018 = vmatmul.mubr.bf16.vlgmr.msra.gmra.mrb[32].mxu0 %v765_v26  ;;  %v737_v38 = vmax.f32 %v633_v27, %v705_v32 }
 0x1fb   :  { %v708_v10 = vmul.f32 0.01, %v639_v36  ;;  %v738_v39 = vmax.f32 %v635_v29, %v706_v35 }
 0x1fc   :  { %v739_v11 = vmax.f32 %v637_v33, %v707_v37 }
 0x1fd   :  { %v740_v40 = vmax.f32 %v639_v36, %v708_v10  ;;  %v642_v41 = vpop.f32.mrb[8].mxu1 }
 0x1fe   :  { %v643_v42 = vadd.f32 %v642_v41, %v3084_v3  ;;  %v644_v43 = vpop.f32.mrb[9].mxu1  ;;  %v767_v44 = vpack.c.bf16 %v739_v11, %v737_v38 }
 0x1ff   :  { %v645_v45 = vadd.f32 %v644_v43, %v3087_v4  ;;  %v646_v46 = vpop.f32.mrb[10].mxu1  ;;  %v768_v47 = vpack.c.bf16 %v740_v40, %v738_v39 }
 0x200   :  { %v709_v48 = vmul.f32 0.01, %v643_v42  ;;  %v647_v49 = vadd.f32 %v646_v46, %v3084_v3  ;;  %v648_v50 = vpop.f32.mrb[11].mxu1 }
 0x201   :  { %v710_v51 = vmul.f32 0.01, %v645_v45  ;;  %v649_v52 = vadd.f32 %v648_v50, %v3087_v4  ;;  %1027 = vmatprep.mubr.bf16.mxu0 %v768_v47 }
 0x202   :  { %v711_v53 = vmul.f32 0.01, %v647_v49  ;;  %1028 = vmatmul.mubr.bf16.gmra.mrb[36].mxu0 %v767_v44  ;;  %v741_v55 = vmax.f32 %v643_v42, %v709_v48 }
 0x203   :  { %v712_v54 = vmul.f32 0.01, %v649_v52  ;;  %v742_v57 = vmax.f32 %v645_v45, %v710_v51 }
 0x204   :  { %v743_v56 = vmax.f32 %v647_v49, %v711_v53 }
 0x205   :  { %v744_v58 = vmax.f32 %v649_v52, %v712_v54  ;;  %v652_v59 = vpop.f32.mrb[12].mxu1 }
 0x206   :  { %v653_v60 = vadd.f32 %v652_v59, %v3084_v3  ;;  %v654_v61 = vpop.f32.mrb[13].mxu1  ;;  %v769_v62 = vpack.c.bf16 %v743_v56, %v741_v55 }
 0x207   :  { %v655_v63 = vadd.f32 %v654_v61, %v3087_v4  ;;  %v656_v0 = vpop.f32.mrb[14].mxu1  ;;  %v770_v1 = vpack.c.bf16 %v744_v58, %v742_v57 }
 0x208   :  { %v713_v2 = vmul.f32 0.01, %v653_v60  ;;  %v657_v5 = vadd.f32 %v656_v0, %v3084_v3  ;;  %v658_v6 = vpop.f32.mrb[15].mxu1 }
 0x209   :  { %v714_v8 = vmul.f32 0.01, %v655_v63  ;;  %v659_v12 = vadd.f32 %v658_v6, %v3087_v4  ;;  %1037 = vmatprep.mubr.bf16.mxu0 %v770_v1 }
 0x20a   :  { %v715_v13 = vmul.f32 0.01, %v657_v5  ;;  %1038 = vmatmul.mubr.bf16.gmra.mrb[40].mxu0 %v769_v62  ;;  %v745_v15 = vmax.f32 %v653_v60, %v713_v2 }
 0x20b   :  { %v716_v14 = vmul.f32 0.01, %v659_v12  ;;  %v746_v17 = vmax.f32 %v655_v63, %v714_v8 }
 0x20c   :  { %v747_v16 = vmax.f32 %v657_v5, %v715_v13 }
 0x20d   :  { %v748_v18 = vmax.f32 %v659_v12, %v716_v14  ;;  %v662_v19 = vpop.f32.mrb[16].mxu1 }
 0x20e   :  { %v663_v20 = vadd.f32 %v662_v19, %v3084_v3  ;;  %v664_v21 = vpop.f32.mrb[17].mxu1  ;;  %v771_v22 = vpack.c.bf16 %v747_v16, %v745_v15 }
 0x20f   :  { %v665_v23 = vadd.f32 %v664_v21, %v3087_v4  ;;  %v666_v24 = vpop.f32.mrb[18].mxu1  ;;  %v772_v25 = vpack.c.bf16 %v748_v18, %v746_v17 }
 0x210   :  { %v717_v26 = vmul.f32 0.01, %v663_v20  ;;  %v667_v27 = vadd.f32 %v666_v24, %v3084_v3  ;;  %v668_v28 = vpop.f32.mrb[19].mxu1 }
 0x211   :  { %v718_v29 = vmul.f32 0.01, %v665_v23  ;;  %v669_v30 = vadd.f32 %v668_v28, %v3087_v4  ;;  %1047 = vmatprep.mubr.bf16.mxu0 %v772_v25 }
 0x212   :  { %v719_v31 = vmul.f32 0.01, %v667_v27  ;;  %1048 = vmatmul.mubr.bf16.gmra.mrb[44].mxu0 %v771_v22  ;;  %v749_v33 = vmax.f32 %v663_v20, %v717_v26 }
 0x213   :  { %v720_v32 = vmul.f32 0.01, %v669_v30  ;;  %v750_v35 = vmax.f32 %v665_v23, %v718_v29 }
 0x214   :  { %v751_v34 = vmax.f32 %v667_v27, %v719_v31 }
 0x215   :  { %v752_v36 = vmax.f32 %v669_v30, %v720_v32  ;;  %v672_v37 = vpop.f32.mrb[20].mxu1 }
 0x216   :  { %v673_v10 = vadd.f32 %v672_v37, %v3084_v3  ;;  %v674_v38 = vpop.f32.mrb[21].mxu1  ;;  %v773_v11 = vpack.c.bf16 %v751_v34, %v749_v33  ;;  %v2624_v33 = vld [vmem:[#allocation4 + $0xd4] ss:$8 sps:$4 sm:$0xff]   ;;  %v2622_v34 = vld [vmem:[#allocation4 + $0xd0] ss:$8 sps:$4 sm:$0xff]  }
 0x217   :  { %v675_v39 = vadd.f32 %v674_v38, %v3087_v4  ;;  %v676_v40 = vpop.f32.mrb[22].mxu1  ;;  %v774_v41 = vpack.c.bf16 %v752_v36, %v750_v35  ;;  %1408 = vmatprep.subr.bf16.mxu1 %v2624_v33  ;;  %v2625_v35 = vld [vmem:[#allocation4 + $0xe0] ss:$8 sps:$4 sm:$0xff]   ;;  %v2628_v36 = vld [vmem:[#allocation4 + $0xf0] ss:$8 sps:$4 sm:$0xff]  }
 0x218   :  { %v721_v42 = vmul.f32 0.01, %v673_v10  ;;  %v677_v43 = vadd.f32 %v676_v40, %v3084_v3  ;;  %v678_v44 = vpop.f32.mrb[23].mxu1  ;;  %1409 = vmatpush1.bf16.msra.mxu1 %v2622_v34  ;;  %v2631_v37 = vld [vmem:[#allocation6] ss:$8 sps:$4 sm:$0xff]  }
 0x219   :  { %v722_v45 = vmul.f32 0.01, %v675_v39  ;;  %v679_v46 = vadd.f32 %v678_v44, %v3087_v4  ;;  %1057 = vmatprep.mubr.bf16.mxu0 %v774_v41  ;;  %v2636_v38 = vld [vmem:[#allocation6 + $0x14] ss:$8 sps:$4 sm:$0xff]   ;;  %v2637_v40 = vld [vmem:[#allocation6 + $0x20] ss:$8 sps:$4 sm:$0xff]  }
 0x21a   :  { %v723_v47 = vmul.f32 0.01, %v677_v43  ;;  %1058 = vmatmul.mubr.bf16.gmra.mrb[48].mxu0 %v773_v11  ;;  %v753_v49 = vmax.f32 %v673_v10, %v721_v42  ;;  %v2633_v10 = vld [vmem:[#allocation6 + $0x4] ss:$8 sps:$4 sm:$0xff]   ;;  %v2634_v11 = vld [vmem:[#allocation6 + $0x10] ss:$8 sps:$4 sm:$0xff]  }
 0x21b   :  { %v724_v48 = vmul.f32 0.01, %v679_v46  ;;  %v754_v51 = vmax.f32 %v675_v39, %v722_v45  ;;  %1779 = vmatprep.subr.bf16.mxu0 %v2633_v10  ;;  %v2639_v39 = vld [vmem:[#allocation6 + $0x24] ss:$8 sps:$4 sm:$0xff]   ;;  %v2642_v41 = vld [vmem:[#allocation6 + $0x34] ss:$8 sps:$4 sm:$0xff]  }
 0x21c   :  { %v755_v50 = vmax.f32 %v677_v43, %v723_v47  ;;  %1780 = vmatpush1.bf16.msra.mxu0 %v2631_v37  ;;  %v2640_v42 = vld [vmem:[#allocation6 + $0x30] ss:$8 sps:$4 sm:$0xff]   ;;  %v2645_v43 = vld [vmem:[#allocation6 + $0x44] ss:$8 sps:$4 sm:$0xff]   ;;  %v2643_v44 = vld [vmem:[#allocation6 + $0x40] ss:$8 sps:$4 sm:$0xff]  }
 0x21d   :  { %v756_v52 = vmax.f32 %v679_v46, %v724_v48  ;;  %v682_v53 = vpop.f32.mrb[24].mxu1  ;;  %1781 = vmatprep.subr.bf16.mxu0 %v2636_v38  ;;  %v2648_v45 = vld [vmem:[#allocation6 + $0x54] ss:$8 sps:$4 sm:$0xff]   ;;  %v2646_v46 = vld [vmem:[#allocation6 + $0x50] ss:$8 sps:$4 sm:$0xff]  }
 0x21e   :  { %v683_v54 = vadd.f32 %v682_v53, %v3084_v3  ;;  %v684_v55 = vpop.f32.mrb[25].mxu1  ;;  %v775_v56 = vpack.c.bf16 %v755_v50, %v753_v49  ;;  %v2651_v47 = vld [vmem:[#allocation6 + $0x64] ss:$8 sps:$4 sm:$0xff]   ;;  %v2649_v48 = vld [vmem:[#allocation6 + $0x60] ss:$8 sps:$4 sm:$0xff]  }
 0x21f   :  { %v685_v57 = vadd.f32 %v684_v55, %v3087_v4  ;;  %v686_v58 = vpop.f32.mrb[26].mxu1  ;;  %v776_v59 = vpack.c.bf16 %v756_v52, %v754_v51  ;;  %v2654_v49 = vld [vmem:[#allocation6 + $0x74] ss:$8 sps:$4 sm:$0xff]   ;;  %v2652_v50 = vld [vmem:[#allocation6 + $0x70] ss:$8 sps:$4 sm:$0xff]  }
 0x220   :  { %v725_v60 = vmul.f32 0.01, %v683_v54  ;;  %v687_v61 = vadd.f32 %v686_v58, %v3084_v3  ;;  %v688_v62 = vpop.f32.mrb[27].mxu1  ;;  %1782 = vmatpush1.bf16.msra.mxu0 %v2634_v11  ;;  %v2657_v51 = vld [vmem:[#allocation6 + $0x84] ss:$8 sps:$4 sm:$0xff]  }
 0x221   :  { %v726_v63 = vmul.f32 0.01, %v685_v57  ;;  %v689_v0 = vadd.f32 %v688_v62, %v3087_v4  ;;  %1067 = vmatprep.mubr.bf16.mxu0 %v776_v59  ;;  %1783 = vmatprep.subr.bf16.mxu0 %v2639_v39  ;;  %v2655_v52 = vld [vmem:[#allocation6 + $0x80] ss:$8 sps:$4 sm:$0xff]   ;;  %v2660_v53 = vld [vmem:[#allocation6 + $0x94] ss:$8 sps:$4 sm:$0xff]  }
 0x222   :  { %v727_v1 = vmul.f32 0.01, %v687_v61  ;;  %1068 = vmatmul.mubr.bf16.gmra.mrb[52].mxu0 %v775_v56  ;;  %v757_v5 = vmax.f32 %v683_v54, %v725_v60  ;;  %v2658_v54 = vld [vmem:[#allocation6 + $0x90] ss:$8 sps:$4 sm:$0xff]   ;;  %v2663_v55 = vld [vmem:[#allocation6 + $0xa4] ss:$8 sps:$4 sm:$0xff]  }
 0x223   :  { %v728_v2 = vmul.f32 0.01, %v689_v0  ;;  %v758_v8 = vmax.f32 %v685_v57, %v726_v63  ;;  %v2661_v56 = vld [vmem:[#allocation6 + $0xa0] ss:$8 sps:$4 sm:$0xff]   ;;  %v2666_v57 = vld [vmem:[#allocation6 + $0xb4] ss:$8 sps:$4 sm:$0xff]  }
 0x224   :  { %v759_v6 = vmax.f32 %v687_v61, %v727_v1  ;;  %1784 = vmatpush1.bf16.msra.mxu0 %v2637_v40  ;;  %v2664_v58 = vld [vmem:[#allocation6 + $0xb0] ss:$8 sps:$4 sm:$0xff]   ;;  %v2669_v59 = vld [vmem:[#allocation6 + $0xc4] ss:$8 sps:$4 sm:$0xff]   ;;  %v2667_v60 = vld [vmem:[#allocation6 + $0xc0] ss:$8 sps:$4 sm:$0xff]  }
 0x225   :  { %v760_v12 = vmax.f32 %v689_v0, %v728_v2  ;;  %v692_v13 = vpop.f32.mrb[28].mxu1  ;;  %1785 = vmatprep.subr.bf16.mxu0 %v2642_v41  ;;  %v813_v61 = vld [vmem:[%s3407_s6] sm:$0x3] }
 0x226   :  { %v693_v14 = vadd.f32 %v692_v13, %v3084_v3  ;;  %v694_v15 = vpop.f32.mrb[29].mxu1  ;;  %v777_v16 = vpack.c.bf16 %v759_v6, %v757_v5  ;;  %v3125_v62 = vrot.slane %v813_v61, %v3035_v7  ;;  %v3128_v63 = vrot.slane %v813_v61, %v3040_v9 }
 0x227   :  { %v695_v17 = vadd.f32 %v694_v15, %v3087_v4  ;;  %v696_v18 = vpop.f32.mrb[30].mxu1  ;;  %v778_v19 = vpack.c.bf16 %v760_v12, %v758_v8 }
 0x228   :  { %v729_v20 = vmul.f32 0.01, %v693_v14  ;;  %v697_v21 = vadd.f32 %v696_v18, %v3084_v3  ;;  %v698_v22 = vpop.f32.mrb[31].mxu1  ;;  %v2627_v3 = vld [vmem:[#allocation4 + $0xe4] ss:$8 sps:$4 sm:$0xff]   ;;  %1786 = vmatpush1.bf16.msra.mxu0 %v2640_v42 }
 0x229   :  { %v730_v23 = vmul.f32 0.01, %v695_v17  ;;  %v699_v24 = vadd.f32 %v698_v22, %v3087_v4  ;;  %1077 = vmatprep.mubr.bf16.mxu0 %v778_v19  ;;  %1410 = vmatprep.subr.bf16.mxu1 %v2627_v3  ;;  %v2630_v4 = vld [vmem:[#allocation4 + $0xf4] ss:$8 sps:$4 sm:$0xff]  }
 0x22a   :  { %v731_v25 = vmul.f32 0.01, %v697_v21  ;;  %1078 = vmatmul.mubr.bf16.gmra.mrb[56].mxu0 %v777_v16  ;;  %v761_v27 = vmax.f32 %v693_v14, %v729_v20  ;;  %1411 = vmatpush1.bf16.msra.mxu1 %v2625_v35 }
 0x22b   :  { %v732_v26 = vmul.f32 0.01, %v699_v24  ;;  %v762_v29 = vmax.f32 %v695_v17, %v730_v23  ;;  %1412 = vmatprep.subr.bf16.mxu1 %v2630_v4  ;;  %1787 = vmatprep.subr.bf16.mxu0 %v2645_v43 }
 0x22c   :  { %v763_v28 = vmax.f32 %v697_v21, %v731_v25  ;;  %1788 = vmatpush1.bf16.msra.mxu0 %v2643_v44 }
 0x22d   :  { %v764_v30 = vmax.f32 %v699_v24, %v732_v26  ;;  %1789 = vmatprep.subr.bf16.mxu0 %v2648_v45 }
 0x22e   :  { %v779_v31 = vpack.c.bf16 %v763_v28, %v761_v27  ;;  %1413 = vmatpush1.bf16.msra.mxu1 %v2628_v36 }
 0x22f   :  { %v780_v32 = vpack.c.bf16 %v764_v30, %v762_v29 }
 0x230   :  { %1790 = vmatpush1.bf16.msra.mxu0 %v2646_v46 }
 0x231   :  { %1087 = vmatprep.mubr.bf16.mxu0 %v780_v32  ;;  %1791 = vmatprep.subr.bf16.mxu0 %v2651_v47 }
 0x232   :  { %1088 = vmatmul.mubr.bf16.gmra.mrb[60].mxu0 %v779_v31 }
 0x234   :  { %1792 = vmatpush1.bf16.msra.mxu0 %v2649_v48 }
 0x235   :  { %1793 = vmatprep.subr.bf16.mxu0 %v2654_v49 }
 0x238   :  { %1794 = vmatpush1.bf16.msra.mxu0 %v2652_v50 }
 0x239   :  { %1795 = vmatprep.subr.bf16.mxu0 %v2657_v51 }
 0x23c   :  { %1796 = vmatpush1.bf16.msra.mxu0 %v2655_v52 }
 0x23d   :  { %1797 = vmatprep.subr.bf16.mxu0 %v2660_v53 }
 0x240   :  { %1798 = vmatpush1.bf16.msra.mxu0 %v2658_v54 }
 0x241   :  { %1799 = vmatprep.subr.bf16.mxu0 %v2663_v55 }
 0x244   :  { %1800 = vmatpush1.bf16.msra.mxu0 %v2661_v56 }
 0x245   :  { %1801 = vmatprep.subr.bf16.mxu0 %v2666_v57 }
 0x248   :  { %1802 = vmatpush1.bf16.msra.mxu0 %v2664_v58 }
 0x249   :  { %1803 = vmatprep.subr.bf16.mxu0 %v2669_v59 }
 0x24c   :  { %1804 = vmatpush1.bf16.msra.mxu0 %v2667_v60 }
 0x2cd   :  { %v1019_v0 = vpop.f32.mrb[32].mxu0 }
 0x2ce   :  { %v1020_v1 = vadd.f32 %v1019_v0, %v3125_v62  ;;  %v1021_v2 = vpop.f32.mrb[33].mxu0 }
 0x2cf   :  { %v1022_v5 = vadd.f32 %v1021_v2, %v3128_v63  ;;  %v1023_v6 = vpop.f32.mrb[34].mxu0 }
 0x2d0   :  { %v1098_v8 = vmul.f32 0.01, %v1020_v1  ;;  %v1024_v12 = vadd.f32 %v1023_v6, %v3125_v62  ;;  %v1025_v13 = vpop.f32.mrb[35].mxu0 }
 0x2d1   :  { %v1099_v14 = vmul.f32 0.01, %v1022_v5  ;;  %v1026_v15 = vadd.f32 %v1025_v13, %v3128_v63 }
 0x2d2   :  { %v1100_v16 = vmul.f32 0.01, %v1024_v12  ;;  %v1130_v18 = vmax.f32 %v1020_v1, %v1098_v8 }
 0x2d3   :  { %v1101_v17 = vmul.f32 0.01, %v1026_v15  ;;  %v1131_v20 = vmax.f32 %v1022_v5, %v1099_v14 }
 0x2d4   :  { %v1132_v19 = vmax.f32 %v1024_v12, %v1100_v16 }
 0x2d5   :  { %v1133_v21 = vmax.f32 %v1026_v15, %v1101_v17  ;;  %v1029_v22 = vpop.f32.mrb[36].mxu0 }
 0x2d6   :  { %v1162_v23 = vpack.c.bf16 %v1132_v19, %v1130_v18  ;;  %v1030_v24 = vadd.f32 %v1029_v22, %v3125_v62  ;;  %v1031_v25 = vpop.f32.mrb[37].mxu0 }
 0x2d7   :  { %v1032_v26 = vadd.f32 %v1031_v25, %v3128_v63  ;;  %v1033_v27 = vpop.f32.mrb[38].mxu0  ;;  %v1163_v28 = vpack.c.bf16 %v1133_v21, %v1131_v20 }
 0x2d8   :  { %v1102_v29 = vmul.f32 0.01, %v1030_v24  ;;  %v1034_v30 = vadd.f32 %v1033_v27, %v3125_v62  ;;  %v1035_v31 = vpop.f32.mrb[39].mxu0 }
 0x2d9   :  { %v1103_v32 = vmul.f32 0.01, %v1032_v26  ;;  %v1036_v33 = vadd.f32 %v1035_v31, %v3128_v63  ;;  %1414 = vmatprep.mubr.bf16.mxu1 %v1163_v28 }
 0x2da   :  { %v1104_v34 = vmul.f32 0.01, %v1034_v30  ;;  %1415 = vmatmul.mubr.bf16.vlgmr.msra.gmra.mrb[32].mxu1 %v1162_v23  ;;  %v1134_v35 = vmax.f32 %v1030_v24, %v1102_v29 }
 0x2db   :  { %v1105_v3 = vmul.f32 0.01, %v1036_v33  ;;  %v1135_v36 = vmax.f32 %v1032_v26, %v1103_v32 }
 0x2dc   :  { %v1136_v4 = vmax.f32 %v1034_v30, %v1104_v34 }
 0x2dd   :  { %v1137_v37 = vmax.f32 %v1036_v33, %v1105_v3  ;;  %v1039_v10 = vpop.f32.mrb[40].mxu0 }
 0x2de   :  { %v1040_v38 = vadd.f32 %v1039_v10, %v3125_v62  ;;  %v1041_v11 = vpop.f32.mrb[41].mxu0  ;;  %v1164_v39 = vpack.c.bf16 %v1136_v4, %v1134_v35 }
 0x2df   :  { %v1042_v40 = vadd.f32 %v1041_v11, %v3128_v63  ;;  %v1043_v41 = vpop.f32.mrb[42].mxu0  ;;  %v1165_v42 = vpack.c.bf16 %v1137_v37, %v1135_v36 }
 0x2e0   :  { %v1106_v43 = vmul.f32 0.01, %v1040_v38  ;;  %v1044_v44 = vadd.f32 %v1043_v41, %v3125_v62  ;;  %v1045_v45 = vpop.f32.mrb[43].mxu0 }
 0x2e1   :  { %v1107_v46 = vmul.f32 0.01, %v1042_v40  ;;  %v1046_v47 = vadd.f32 %v1045_v45, %v3128_v63  ;;  %1424 = vmatprep.mubr.bf16.mxu1 %v1165_v42 }
 0x2e2   :  { %v1108_v48 = vmul.f32 0.01, %v1044_v44  ;;  %1425 = vmatmul.mubr.bf16.gmra.mrb[36].mxu1 %v1164_v39  ;;  %v1138_v50 = vmax.f32 %v1040_v38, %v1106_v43 }
 0x2e3   :  { %v1109_v49 = vmul.f32 0.01, %v1046_v47  ;;  %v1139_v52 = vmax.f32 %v1042_v40, %v1107_v46 }
 0x2e4   :  { %v1140_v51 = vmax.f32 %v1044_v44, %v1108_v48 }
 0x2e5   :  { %v1141_v53 = vmax.f32 %v1046_v47, %v1109_v49  ;;  %v1049_v54 = vpop.f32.mrb[44].mxu0 }
 0x2e6   :  { %v1050_v55 = vadd.f32 %v1049_v54, %v3125_v62  ;;  %v1051_v56 = vpop.f32.mrb[45].mxu0  ;;  %v1166_v57 = vpack.c.bf16 %v1140_v51, %v1138_v50 }
 0x2e7   :  { %v1052_v58 = vadd.f32 %v1051_v56, %v3128_v63  ;;  %v1053_v59 = vpop.f32.mrb[46].mxu0  ;;  %v1167_v60 = vpack.c.bf16 %v1141_v53, %v1139_v52 }
 0x2e8   :  { %v1110_v61 = vmul.f32 0.01, %v1050_v55  ;;  %v1054_v0 = vadd.f32 %v1053_v59, %v3125_v62  ;;  %v1055_v1 = vpop.f32.mrb[47].mxu0 }
 0x2e9   :  { %v1111_v2 = vmul.f32 0.01, %v1052_v58  ;;  %v1056_v5 = vadd.f32 %v1055_v1, %v3128_v63  ;;  %1434 = vmatprep.mubr.bf16.mxu1 %v1167_v60 }
 0x2ea   :  { %v1112_v6 = vmul.f32 0.01, %v1054_v0  ;;  %1435 = vmatmul.mubr.bf16.gmra.mrb[40].mxu1 %v1166_v57  ;;  %v1142_v12 = vmax.f32 %v1050_v55, %v1110_v61 }
 0x2eb   :  { %v1113_v8 = vmul.f32 0.01, %v1056_v5  ;;  %v1143_v14 = vmax.f32 %v1052_v58, %v1111_v2 }
 0x2ec   :  { %v1144_v13 = vmax.f32 %v1054_v0, %v1112_v6 }
 0x2ed   :  { %v1145_v15 = vmax.f32 %v1056_v5, %v1113_v8  ;;  %v1059_v16 = vpop.f32.mrb[48].mxu0 }
 0x2ee   :  { %v1060_v17 = vadd.f32 %v1059_v16, %v3125_v62  ;;  %v1061_v18 = vpop.f32.mrb[49].mxu0  ;;  %v1168_v19 = vpack.c.bf16 %v1144_v13, %v1142_v12 }
 0x2ef   :  { %v1062_v20 = vadd.f32 %v1061_v18, %v3128_v63  ;;  %v1063_v21 = vpop.f32.mrb[50].mxu0  ;;  %v1169_v22 = vpack.c.bf16 %v1145_v15, %v1143_v14 }
 0x2f0   :  { %v1114_v23 = vmul.f32 0.01, %v1060_v17  ;;  %v1064_v24 = vadd.f32 %v1063_v21, %v3125_v62  ;;  %v1065_v25 = vpop.f32.mrb[51].mxu0 }
 0x2f1   :  { %v1115_v26 = vmul.f32 0.01, %v1062_v20  ;;  %v1066_v27 = vadd.f32 %v1065_v25, %v3128_v63  ;;  %1444 = vmatprep.mubr.bf16.mxu1 %v1169_v22 }
 0x2f2   :  { %v1116_v28 = vmul.f32 0.01, %v1064_v24  ;;  %1445 = vmatmul.mubr.bf16.gmra.mrb[44].mxu1 %v1168_v19  ;;  %v1146_v30 = vmax.f32 %v1060_v17, %v1114_v23 }
 0x2f3   :  { %v1117_v29 = vmul.f32 0.01, %v1066_v27  ;;  %v1147_v32 = vmax.f32 %v1062_v20, %v1115_v26 }
 0x2f4   :  { %v1148_v31 = vmax.f32 %v1064_v24, %v1116_v28 }
 0x2f5   :  { %v1149_v33 = vmax.f32 %v1066_v27, %v1117_v29  ;;  %v1069_v34 = vpop.f32.mrb[52].mxu0 }
 0x2f6   :  { %v1070_v3 = vadd.f32 %v1069_v34, %v3125_v62  ;;  %v1071_v35 = vpop.f32.mrb[53].mxu0  ;;  %v1170_v4 = vpack.c.bf16 %v1148_v31, %v1146_v30  ;;  %v2672_v30 = vld [vmem:[#allocation6 + $0xd4] ss:$8 sps:$4 sm:$0xff]   ;;  %v2670_v31 = vld [vmem:[#allocation6 + $0xd0] ss:$8 sps:$4 sm:$0xff]   ;;  %v2679_v34 = vld [vmem:[%s3412_s11 + $0x40] sm:$0xff]  }
 0x2f7   :  { %v1072_v36 = vadd.f32 %v1071_v35, %v3128_v63  ;;  %v1073_v37 = vpop.f32.mrb[54].mxu0  ;;  %v1171_v10 = vpack.c.bf16 %v1149_v33, %v1147_v32  ;;  %1805 = vmatprep.subr.bf16.mxu0 %v2672_v30  ;;  %v2673_v32 = vld [vmem:[#allocation6 + $0xe0] ss:$8 sps:$4 sm:$0xff]   ;;  %v2676_v33 = vld [vmem:[#allocation6 + $0xf0] ss:$8 sps:$4 sm:$0xff]   ;;  %2454 = vmatprep.subr.bf16.mxu1 %v2679_v34 }
 0x2f8   :  { %v1118_v38 = vmul.f32 0.01, %v1070_v3  ;;  %v1074_v11 = vadd.f32 %v1073_v37, %v3125_v62  ;;  %v1075_v39 = vpop.f32.mrb[55].mxu0  ;;  %1806 = vmatpush1.bf16.msra.mxu0 %v2670_v31  ;;  %v2681_v35 = vld [vmem:[%s3412_s11 + $0x48] sm:$0xff]   ;;  %v3183_v37 = vld [vmem:[%s3412_s11 + $0x10] sm:$0xff]  }
 0x2f9   :  { %v1119_v40 = vmul.f32 0.01, %v1072_v36  ;;  %v1076_v41 = vadd.f32 %v1075_v39, %v3128_v63  ;;  %1454 = vmatprep.mubr.bf16.mxu1 %v1171_v10  ;;  %v3188_v10 = vld [vmem:[%s3412_s11 + $0x58] sm:$0xff]   ;;  %v3207_v39 = vld [vmem:[%s3412_s11 + $0x20] sm:$0xff]  }
 0x2fa   :  { %v1120_v42 = vmul.f32 0.01, %v1074_v11  ;;  %1455 = vmatmul.mubr.bf16.gmra.mrb[48].mxu1 %v1170_v4  ;;  %v1150_v44 = vmax.f32 %v1070_v3, %v1118_v38  ;;  %v2680_v3 = vld [vmem:[%s3412_s11] sm:$0xff]   ;;  %v2682_v4 = vld [vmem:[%s3412_s11 + $0x8] sm:$0xff]   ;;  %v3195_v38 = vld [vmem:[%s3412_s11 + $0x18] sm:$0xff]  }
 0x2fb   :  { %v1121_v43 = vmul.f32 0.01, %v1076_v41  ;;  %v1151_v46 = vmax.f32 %v1072_v36, %v1119_v40  ;;  %2462 = vmatpush3.bf16.msra.mxu1 %v2680_v3  ;;  %v3177_v36 = vld [vmem:[%s3412_s11 + $0x50] sm:$0xff]   ;;  %v1210_v40 = vld [vmem:[%s3409_s8] sm:$0x3] }
 0x2fc   :  { %v1152_v45 = vmax.f32 %v1074_v11, %v1120_v42  ;;  %2455 = vmatprep.subr.bf16.mxu1 %v2681_v35  ;;  %v3200_v11 = vld [vmem:[%s3412_s11 + $0x60] sm:$0xff]   ;;  %v3217_v42 = vrot.slane %v1210_v40, %v3040_v9 }
 0x2fd   :  { %v1153_v47 = vmax.f32 %v1076_v41, %v1121_v43  ;;  %v1079_v48 = vpop.f32.mrb[56].mxu0  ;;  %v3214_v41 = vrot.slane %v1210_v40, %v3035_v7 }
 0x2fe   :  { %v1080_v49 = vadd.f32 %v1079_v48, %v3125_v62  ;;  %v1081_v50 = vpop.f32.mrb[57].mxu0  ;;  %v1172_v51 = vpack.c.bf16 %v1152_v45, %v1150_v44 }
 0x2ff   :  { %v1082_v52 = vadd.f32 %v1081_v50, %v3128_v63  ;;  %v1083_v53 = vpop.f32.mrb[58].mxu0  ;;  %v1173_v54 = vpack.c.bf16 %v1153_v47, %v1151_v46  ;;  %2463 = vmatpush3.bf16.msra.mxu1 %v2682_v4 }
 0x300   :  { %v1122_v55 = vmul.f32 0.01, %v1080_v49  ;;  %v1084_v56 = vadd.f32 %v1083_v53, %v3125_v62  ;;  %v1085_v57 = vpop.f32.mrb[59].mxu0  ;;  %2456 = vmatprep.subr.bf16.mxu1 %v3177_v36 }
 0x301   :  { %v1123_v58 = vmul.f32 0.01, %v1082_v52  ;;  %v1086_v59 = vadd.f32 %v1085_v57, %v3128_v63  ;;  %1464 = vmatprep.mubr.bf16.mxu1 %v1173_v54 }
 0x302   :  { %v1124_v60 = vmul.f32 0.01, %v1084_v56  ;;  %1465 = vmatmul.mubr.bf16.gmra.mrb[52].mxu1 %v1172_v51  ;;  %v1154_v0 = vmax.f32 %v1080_v49, %v1122_v55 }
 0x303   :  { %v1125_v61 = vmul.f32 0.01, %v1086_v59  ;;  %v1155_v2 = vmax.f32 %v1082_v52, %v1123_v58  ;;  %2464 = vmatpush3.bf16.msra.mxu1 %v3183_v37 }
 0x304   :  { %v1156_v1 = vmax.f32 %v1084_v56, %v1124_v60  ;;  %2457 = vmatprep.subr.bf16.mxu1 %v3188_v10 }
 0x305   :  { %v1157_v5 = vmax.f32 %v1086_v59, %v1125_v61  ;;  %v1089_v6 = vpop.f32.mrb[60].mxu0 }
 0x306   :  { %v1090_v8 = vadd.f32 %v1089_v6, %v3125_v62  ;;  %v1091_v12 = vpop.f32.mrb[61].mxu0  ;;  %v1174_v13 = vpack.c.bf16 %v1156_v1, %v1154_v0 }
 0x307   :  { %v1092_v14 = vadd.f32 %v1091_v12, %v3128_v63  ;;  %v1093_v15 = vpop.f32.mrb[62].mxu0  ;;  %v1175_v16 = vpack.c.bf16 %v1157_v5, %v1155_v2  ;;  %2465 = vmatpush3.bf16.msra.mxu1 %v3195_v38 }
 0x308   :  { %v1126_v17 = vmul.f32 0.01, %v1090_v8  ;;  %v1094_v18 = vadd.f32 %v1093_v15, %v3125_v62  ;;  %v1095_v19 = vpop.f32.mrb[63].mxu0  ;;  %v2675_v62 = vld [vmem:[#allocation6 + $0xe4] ss:$8 sps:$4 sm:$0xff]   ;;  %2458 = vmatprep.subr.bf16.mxu1 %v3200_v11 }
 0x309   :  { %v1127_v20 = vmul.f32 0.01, %v1092_v14  ;;  %v1096_v21 = vadd.f32 %v1095_v19, %v3128_v63  ;;  %1474 = vmatprep.mubr.bf16.mxu1 %v1175_v16  ;;  %1807 = vmatprep.subr.bf16.mxu0 %v2675_v62  ;;  %v2678_v63 = vld [vmem:[#allocation6 + $0xf4] ss:$8 sps:$4 sm:$0xff]  }
 0x30a   :  { %v1128_v22 = vmul.f32 0.01, %v1094_v18  ;;  %1475 = vmatmul.mubr.bf16.gmra.mrb[56].mxu1 %v1174_v13  ;;  %v1158_v24 = vmax.f32 %v1090_v8, %v1126_v17  ;;  %1808 = vmatpush1.bf16.msra.mxu0 %v2673_v32 }
 0x30b   :  { %v1129_v23 = vmul.f32 0.01, %v1096_v21  ;;  %v1159_v26 = vmax.f32 %v1092_v14, %v1127_v20  ;;  %1809 = vmatprep.subr.bf16.mxu0 %v2678_v63  ;;  %2466 = vmatpush3.bf16.msra.mxu1 %v3207_v39 }
 0x30c   :  { %v1160_v25 = vmax.f32 %v1094_v18, %v1128_v22 }
 0x30d   :  { %v1161_v27 = vmax.f32 %v1096_v21, %v1129_v23 }
 0x30e   :  { %v1176_v28 = vpack.c.bf16 %v1160_v25, %v1158_v24  ;;  %1810 = vmatpush1.bf16.msra.mxu0 %v2676_v33 }
 0x30f   :  { %v1177_v29 = vpack.c.bf16 %v1161_v27, %v1159_v26  ;;  %2390 = vmatprep.subr.bf16.mxu0 %v2679_v34 }
 0x311   :  { %1484 = vmatprep.mubr.bf16.mxu1 %v1177_v29 }
 0x312   :  { %1485 = vmatmul.mubr.bf16.gmra.mrb[60].mxu1 %v1176_v28 }
 0x3ad   :  { %v1416_v43 = vpop.f32.mrb[32].mxu1 }
 0x3ae   :  { %v1417_v44 = vadd.f32 %v1416_v43, %v3214_v41  ;;  %v1418_v45 = vpop.f32.mrb[33].mxu1 }
 0x3af   :  { %v1419_v46 = vadd.f32 %v1418_v45, %v3217_v42  ;;  %v1420_v47 = vpop.f32.mrb[34].mxu1 }
 0x3b0   :  { %v1495_v48 = vmul.f32 0.01, %v1417_v44  ;;  %v1421_v49 = vadd.f32 %v1420_v47, %v3214_v41  ;;  %v1422_v50 = vpop.f32.mrb[35].mxu1 }
 0x3b1   :  { %v1496_v51 = vmul.f32 0.01, %v1419_v46  ;;  %v1423_v52 = vadd.f32 %v1422_v50, %v3217_v42 }
 0x3b2   :  { %v1497_v53 = vmul.f32 0.01, %v1421_v49  ;;  %v1527_v55 = vmax.f32 %v1417_v44, %v1495_v48 }
 0x3b3   :  { %v1498_v54 = vmul.f32 0.01, %v1423_v52  ;;  %v1528_v57 = vmax.f32 %v1419_v46, %v1496_v51 }
 0x3b4   :  { %v1529_v56 = vmax.f32 %v1421_v49, %v1497_v53 }
 0x3b5   :  { %v1530_v58 = vmax.f32 %v1423_v52, %v1498_v54  ;;  %v1426_v59 = vpop.f32.mrb[36].mxu1 }
 0x3b6   :  { %v1559_v60 = vpack.c.bf16 %v1529_v56, %v1527_v55  ;;  %v1427_v61 = vadd.f32 %v1426_v59, %v3214_v41  ;;  %v1428_v0 = vpop.f32.mrb[37].mxu1 }
 0x3b7   :  { %v1429_v1 = vadd.f32 %v1428_v0, %v3217_v42  ;;  %v1430_v2 = vpop.f32.mrb[38].mxu1  ;;  %v1560_v5 = vpack.c.bf16 %v1530_v58, %v1528_v57 }
 0x3b8   :  { %v1499_v6 = vmul.f32 0.01, %v1427_v61  ;;  %v1431_v8 = vadd.f32 %v1430_v2, %v3214_v41  ;;  %v1432_v12 = vpop.f32.mrb[39].mxu1 }
 0x3b9   :  { %v1500_v13 = vmul.f32 0.01, %v1429_v1  ;;  %v1433_v14 = vadd.f32 %v1432_v12, %v3217_v42  ;;  %1811 = vmatprep.mubr.bf16.mxu0 %v1560_v5 }
 0x3ba   :  { %v1501_v15 = vmul.f32 0.01, %v1431_v8  ;;  %1812 = vmatmul.mubr.bf16.vlgmr.msra.gmra.mrb[64].mxu0 %v1559_v60  ;;  %v1531_v17 = vmax.f32 %v1427_v61, %v1499_v6 }
 0x3bb   :  { %v1502_v16 = vmul.f32 0.01, %v1433_v14  ;;  %2391 = vmatpush3.bf16.msra.mxu0 %v2680_v3  ;;  %v1532_v19 = vmax.f32 %v1429_v1, %v1500_v13 }
 0x3bc   :  { %v1533_v18 = vmax.f32 %v1431_v8, %v1501_v15  ;;  %2392 = vmatprep.subr.bf16.mxu0 %v2681_v35 }
 0x3bd   :  { %v1534_v20 = vmax.f32 %v1433_v14, %v1502_v16  ;;  %v1436_v21 = vpop.f32.mrb[40].mxu1 }
 0x3be   :  { %v1437_v22 = vadd.f32 %v1436_v21, %v3214_v41  ;;  %v1438_v23 = vpop.f32.mrb[41].mxu1  ;;  %v1561_v24 = vpack.c.bf16 %v1533_v18, %v1531_v17 }
 0x3bf   :  { %v1439_v25 = vadd.f32 %v1438_v23, %v3217_v42  ;;  %v1440_v26 = vpop.f32.mrb[42].mxu1  ;;  %v1562_v27 = vpack.c.bf16 %v1534_v20, %v1532_v19  ;;  %2393 = vmatpush3.bf16.msra.mxu0 %v2682_v4 }
 0x3c0   :  { %v1503_v28 = vmul.f32 0.01, %v1437_v22  ;;  %v1441_v29 = vadd.f32 %v1440_v26, %v3214_v41  ;;  %v1442_v30 = vpop.f32.mrb[43].mxu1  ;;  %2394 = vmatprep.subr.bf16.mxu0 %v3177_v36 }
 0x3c1   :  { %v1504_v31 = vmul.f32 0.01, %v1439_v25  ;;  %v1443_v62 = vadd.f32 %v1442_v30, %v3217_v42  ;;  %1821 = vmatprep.mubr.bf16.mxu0 %v1562_v27 }
 0x3c2   :  { %v1505_v32 = vmul.f32 0.01, %v1441_v29  ;;  %1822 = vmatmul.mubr.bf16.gmra.mrb[68].mxu0 %v1561_v24  ;;  %v1535_v33 = vmax.f32 %v1437_v22, %v1503_v28 }
 0x3c3   :  { %v1506_v63 = vmul.f32 0.01, %v1443_v62  ;;  %2395 = vmatpush3.bf16.msra.mxu0 %v3183_v37  ;;  %v1536_v3 = vmax.f32 %v1439_v25, %v1504_v31 }
 0x3c4   :  { %v1537_v34 = vmax.f32 %v1441_v29, %v1505_v32  ;;  %2396 = vmatprep.subr.bf16.mxu0 %v3188_v10 }
 0x3c5   :  { %v1538_v35 = vmax.f32 %v1443_v62, %v1506_v63  ;;  %v1446_v4 = vpop.f32.mrb[44].mxu1 }
 0x3c6   :  { %v1447_v40 = vadd.f32 %v1446_v4, %v3214_v41  ;;  %v1448_v43 = vpop.f32.mrb[45].mxu1  ;;  %v1563_v36 = vpack.c.bf16 %v1537_v34, %v1535_v33 }
 0x3c7   :  { %v1449_v44 = vadd.f32 %v1448_v43, %v3217_v42  ;;  %v1450_v45 = vpop.f32.mrb[46].mxu1  ;;  %v1564_v46 = vpack.c.bf16 %v1538_v35, %v1536_v3  ;;  %2397 = vmatpush3.bf16.msra.mxu0 %v3195_v38 }
 0x3c8   :  { %v1507_v47 = vmul.f32 0.01, %v1447_v40  ;;  %v1451_v37 = vadd.f32 %v1450_v45, %v3214_v41  ;;  %v1452_v48 = vpop.f32.mrb[47].mxu1  ;;  %2398 = vmatprep.subr.bf16.mxu0 %v3200_v11 }
 0x3c9   :  { %v1508_v10 = vmul.f32 0.01, %v1449_v44  ;;  %v1453_v49 = vadd.f32 %v1452_v48, %v3217_v42  ;;  %1831 = vmatprep.mubr.bf16.mxu0 %v1564_v46 }
 0x3ca   :  { %v1509_v50 = vmul.f32 0.01, %v1451_v37  ;;  %1832 = vmatmul.mubr.bf16.gmra.mrb[72].mxu0 %v1563_v36  ;;  %v1539_v52 = vmax.f32 %v1447_v40, %v1507_v47 }
 0x3cb   :  { %v1510_v51 = vmul.f32 0.01, %v1453_v49  ;;  %2399 = vmatpush3.bf16.msra.mxu0 %v3207_v39  ;;  %v1540_v54 = vmax.f32 %v1449_v44, %v1508_v10 }
 0x3cc   :  { %v1541_v53 = vmax.f32 %v1451_v37, %v1509_v50 }
 0x3cd   :  { %v1542_v55 = vmax.f32 %v1453_v49, %v1510_v51  ;;  %v1456_v38 = vpop.f32.mrb[48].mxu1 }
 0x3ce   :  { %v1457_v56 = vadd.f32 %v1456_v38, %v3214_v41  ;;  %v1458_v57 = vpop.f32.mrb[49].mxu1  ;;  %v1565_v58 = vpack.c.bf16 %v1541_v53, %v1539_v52 }
 0x3cf   :  { %v1459_v11 = vadd.f32 %v1458_v57, %v3217_v42  ;;  %v1460_v59 = vpop.f32.mrb[50].mxu1  ;;  %v1566_v60 = vpack.c.bf16 %v1542_v55, %v1540_v54 }
 0x3d0   :  { %v1511_v61 = vmul.f32 0.01, %v1457_v56  ;;  %v1461_v0 = vadd.f32 %v1460_v59, %v3214_v41  ;;  %v1462_v1 = vpop.f32.mrb[51].mxu1 }
 0x3d1   :  { %v1512_v2 = vmul.f32 0.01, %v1459_v11  ;;  %v1463_v39 = vadd.f32 %v1462_v1, %v3217_v42  ;;  %1841 = vmatprep.mubr.bf16.mxu0 %v1566_v60 }
 0x3d2   :  { %v1513_v5 = vmul.f32 0.01, %v1461_v0  ;;  %1842 = vmatmul.mubr.bf16.gmra.mrb[76].mxu0 %v1565_v58  ;;  %v1543_v8 = vmax.f32 %v1457_v56, %v1511_v61 }
 0x3d3   :  { %v1514_v6 = vmul.f32 0.01, %v1463_v39  ;;  %v1544_v13 = vmax.f32 %v1459_v11, %v1512_v2 }
 0x3d4   :  { %v1545_v12 = vmax.f32 %v1461_v0, %v1513_v5 }
 0x3d5   :  { %v1546_v14 = vmax.f32 %v1463_v39, %v1514_v6  ;;  %v1466_v15 = vpop.f32.mrb[52].mxu1 }
 0x3d6   :  { %v1467_v16 = vadd.f32 %v1466_v15, %v3214_v41  ;;  %v1468_v17 = vpop.f32.mrb[53].mxu1  ;;  %v1567_v18 = vpack.c.bf16 %v1545_v12, %v1543_v8  ;;  %v2691_v8 = vld [vmem:[%s3412_s11 + $0x70] sm:$0xff]   ;;  %v1607_v15 = vld [vmem:[%s3411_s10] sm:$0x3] }
 0x3d7   :  { %v1469_v19 = vadd.f32 %v1468_v17, %v3217_v42  ;;  %v1470_v20 = vpop.f32.mrb[54].mxu1  ;;  %v1568_v21 = vpack.c.bf16 %v1546_v14, %v1544_v13  ;;  %v2692_v12 = vld [vmem:[%s3412_s11 + $0x30] sm:$0xff]   ;;  %v2693_v13 = vld [vmem:[%s3412_s11 + $0x78] sm:$0xff]   ;;  %v3282_v17 = vrot.slane %v1607_v15, %v3040_v9 }
 0x3d8   :  { %v1515_v22 = vmul.f32 0.01, %v1467_v16  ;;  %v1471_v23 = vadd.f32 %v1470_v20, %v3214_v41  ;;  %v1472_v24 = vpop.f32.mrb[55].mxu1  ;;  %v2694_v14 = vld [vmem:[%s3412_s11 + $0x38] sm:$0xff]  }
 0x3d9   :  { %v1516_v25 = vmul.f32 0.01, %v1469_v19  ;;  %v1473_v26 = vadd.f32 %v1472_v24, %v3217_v42  ;;  %1851 = vmatprep.mubr.bf16.mxu0 %v1568_v21 }
 0x3da   :  { %v1517_v27 = vmul.f32 0.01, %v1471_v23  ;;  %1852 = vmatmul.mubr.bf16.gmra.mrb[80].mxu0 %v1567_v18  ;;  %v1547_v29 = vmax.f32 %v1467_v16, %v1515_v22  ;;  %v3279_v16 = vrot.slane %v1607_v15, %v3035_v7 }
 0x3db   :  { %v1518_v28 = vmul.f32 0.01, %v1473_v26  ;;  %v1548_v31 = vmax.f32 %v1469_v19, %v1516_v25 }
 0x3dc   :  { %v1549_v30 = vmax.f32 %v1471_v23, %v1517_v27 }
 0x3dd   :  { %v1550_v62 = vmax.f32 %v1473_v26, %v1518_v28  ;;  %v1476_v32 = vpop.f32.mrb[56].mxu1 }
 0x3de   :  { %v1477_v63 = vadd.f32 %v1476_v32, %v3214_v41  ;;  %v1478_v33 = vpop.f32.mrb[57].mxu1  ;;  %v1569_v34 = vpack.c.bf16 %v1549_v30, %v1547_v29 }
 0x3df   :  { %v1479_v3 = vadd.f32 %v1478_v33, %v3217_v42  ;;  %v1480_v35 = vpop.f32.mrb[58].mxu1  ;;  %v1570_v4 = vpack.c.bf16 %v1550_v62, %v1548_v31 }
 0x3e0   :  { %v1519_v40 = vmul.f32 0.01, %v1477_v63  ;;  %v1481_v43 = vadd.f32 %v1480_v35, %v3214_v41  ;;  %v1482_v36 = vpop.f32.mrb[59].mxu1 }
 0x3e1   :  { %v1520_v44 = vmul.f32 0.01, %v1479_v3  ;;  %v1483_v45 = vadd.f32 %v1482_v36, %v3217_v42  ;;  %1861 = vmatprep.mubr.bf16.mxu0 %v1570_v4 }
 0x3e2   :  { %v1521_v46 = vmul.f32 0.01, %v1481_v43  ;;  %1862 = vmatmul.mubr.bf16.gmra.mrb[84].mxu0 %v1569_v34  ;;  %v1551_v37 = vmax.f32 %v1477_v63, %v1519_v40 }
 0x3e3   :  { %v1522_v47 = vmul.f32 0.01, %v1483_v45  ;;  %v1552_v10 = vmax.f32 %v1479_v3, %v1520_v44 }
 0x3e4   :  { %v1553_v48 = vmax.f32 %v1481_v43, %v1521_v46 }
 0x3e5   :  { %v1554_v49 = vmax.f32 %v1483_v45, %v1522_v47  ;;  %v1486_v50 = vpop.f32.mrb[60].mxu1 }
 0x3e6   :  { %v1487_v51 = vadd.f32 %v1486_v50, %v3214_v41  ;;  %v1488_v52 = vpop.f32.mrb[61].mxu1  ;;  %v1571_v53 = vpack.c.bf16 %v1553_v48, %v1551_v37 }
 0x3e7   :  { %v1489_v54 = vadd.f32 %v1488_v52, %v3217_v42  ;;  %v1490_v55 = vpop.f32.mrb[62].mxu1  ;;  %v1572_v38 = vpack.c.bf16 %v1554_v49, %v1552_v10 }
 0x3e8   :  { %v1523_v56 = vmul.f32 0.01, %v1487_v51  ;;  %v1491_v57 = vadd.f32 %v1490_v55, %v3214_v41  ;;  %v1492_v58 = vpop.f32.mrb[63].mxu1  ;;  %v2689_v41 = vld [vmem:[%s3412_s11 + $0x68] sm:$0xff]  }
 0x3e9   :  { %v1524_v11 = vmul.f32 0.01, %v1489_v54  ;;  %v1493_v59 = vadd.f32 %v1492_v58, %v3217_v42  ;;  %1871 = vmatprep.mubr.bf16.mxu0 %v1572_v38  ;;  %v2690_v42 = vld [vmem:[%s3412_s11 + $0x28] sm:$0xff]   ;;  %2400 = vmatprep.subr.bf16.mxu0 %v2689_v41 }
 0x3ea   :  { %v1525_v60 = vmul.f32 0.01, %v1491_v57  ;;  %1872 = vmatmul.mubr.bf16.gmra.mrb[88].mxu0 %v1571_v53  ;;  %v1555_v0 = vmax.f32 %v1487_v51, %v1523_v56  ;;  %2459 = vmatprep.subr.bf16.mxu1 %v2689_v41 }
 0x3eb   :  { %v1526_v61 = vmul.f32 0.01, %v1493_v59  ;;  %v1556_v2 = vmax.f32 %v1489_v54, %v1524_v11  ;;  %2401 = vmatpush3.bf16.msra.mxu0 %v2690_v42  ;;  %2467 = vmatpush3.bf16.msra.mxu1 %v2690_v42 }
 0x3ec   :  { %v1557_v1 = vmax.f32 %v1491_v57, %v1525_v60  ;;  %2402 = vmatprep.subr.bf16.mxu0 %v2691_v8  ;;  %2460 = vmatprep.subr.bf16.mxu1 %v2691_v8 }
 0x3ed   :  { %v1558_v39 = vmax.f32 %v1493_v59, %v1526_v61 }
 0x3ee   :  { %v1573_v5 = vpack.c.bf16 %v1557_v1, %v1555_v0 }
 0x3ef   :  { %v1574_v6 = vpack.c.bf16 %v1558_v39, %v1556_v2  ;;  %2403 = vmatpush3.bf16.msra.mxu0 %v2692_v12  ;;  %2468 = vmatpush3.bf16.msra.mxu1 %v2692_v12 }
 0x3f0   :  { %2404 = vmatprep.subr.bf16.mxu0 %v2693_v13  ;;  %2461 = vmatprep.subr.bf16.mxu1 %v2693_v13 }
 0x3f1   :  { %1881 = vmatprep.mubr.bf16.mxu0 %v1574_v6 }
 0x3f2   :  { %1882 = vmatmul.mubr.bf16.gmra.mrb[92].mxu0 %v1573_v5 }
 0x3f3   :  { %2405 = vmatpush3.bf16.msra.mxu0 %v2694_v14  ;;  %2469 = vmatpush3.bf16.msra.mxu1 %v2694_v14 }
 0x48d   :  { %v1813_v18 = vpop.f32.mrb[64].mxu0 }
 0x48e   :  { %v1814_v19 = vadd.f32 %v1813_v18, %v3279_v16  ;;  %v1815_v20 = vpop.f32.mrb[65].mxu0 }
 0x48f   :  { %v1816_v21 = vadd.f32 %v1815_v20, %v3282_v17  ;;  %v1817_v22 = vpop.f32.mrb[66].mxu0 }
 0x490   :  { %v1892_v23 = vmul.f32 0.01, %v1814_v19  ;;  %v1818_v24 = vadd.f32 %v1817_v22, %v3279_v16  ;;  %v1819_v25 = vpop.f32.mrb[67].mxu0 }
 0x491   :  { %v1893_v26 = vmul.f32 0.01, %v1816_v21  ;;  %v1820_v27 = vadd.f32 %v1819_v25, %v3282_v17 }
 0x492   :  { %v1894_v28 = vmul.f32 0.01, %v1818_v24  ;;  %v1924_v29 = vmax.f32 %v1814_v19, %v1892_v23 }
 0x493   :  { %v1895_v7 = vmul.f32 0.01, %v1820_v27  ;;  %v1925_v9 = vmax.f32 %v1816_v21, %v1893_v26 }
 0x494   :  { %v1926_v30 = vmax.f32 %v1818_v24, %v1894_v28 }
 0x495   :  { %v1927_v31 = vmax.f32 %v1820_v27, %v1895_v7  ;;  %v1823_v62 = vpop.f32.mrb[68].mxu0 }
 0x496   :  { %v1956_v32 = vpack.c.bf16 %v1926_v30, %v1924_v29  ;;  %v1824_v63 = vadd.f32 %v1823_v62, %v3279_v16  ;;  %v1825_v33 = vpop.f32.mrb[69].mxu0 }
 0x497   :  { %v1826_v34 = vadd.f32 %v1825_v33, %v3282_v17  ;;  %v1827_v3 = vpop.f32.mrb[70].mxu0  ;;  %v1957_v35 = vpack.c.bf16 %v1927_v31, %v1925_v9 }
 0x498   :  { %v1896_v4 = vmul.f32 0.01, %v1824_v63  ;;  %v1828_v40 = vadd.f32 %v1827_v3, %v3279_v16  ;;  %v1829_v43 = vpop.f32.mrb[71].mxu0 }
 0x499   :  { %v1897_v36 = vmul.f32 0.01, %v1826_v34  ;;  %v1830_v44 = vadd.f32 %v1829_v43, %v3282_v17  ;;  %2139 = vmatprep.mubr.bf16.mxu0 %v1957_v35 }
 0x49a   :  { %v1898_v45 = vmul.f32 0.01, %v1828_v40  ;;  %2140 = vmatmul.mubr.bf16.vlgmr.msra.gmra.mrb[96].mxu0 %v1956_v32  ;;  %v1928_v47 = vmax.f32 %v1824_v63, %v1896_v4 }
 0x49b   :  { %v1899_v46 = vmul.f32 0.01, %v1830_v44  ;;  %v1929_v48 = vmax.f32 %v1826_v34, %v1897_v36 }
 0x49c   :  { %v1930_v37 = vmax.f32 %v1828_v40, %v1898_v45 }
 0x49d   :  { %v1931_v10 = vmax.f32 %v1830_v44, %v1899_v46  ;;  %v1833_v49 = vpop.f32.mrb[72].mxu0 }
 0x49e   :  { %v1834_v50 = vadd.f32 %v1833_v49, %v3279_v16  ;;  %v1835_v51 = vpop.f32.mrb[73].mxu0  ;;  %v1958_v52 = vpack.c.bf16 %v1930_v37, %v1928_v47 }
 0x49f   :  { %v1836_v53 = vadd.f32 %v1835_v51, %v3282_v17  ;;  %v1837_v54 = vpop.f32.mrb[74].mxu0  ;;  %v1959_v55 = vpack.c.bf16 %v1931_v10, %v1929_v48 }
 0x4a0   :  { %v1900_v38 = vmul.f32 0.01, %v1834_v50  ;;  %v1838_v56 = vadd.f32 %v1837_v54, %v3279_v16  ;;  %v1839_v57 = vpop.f32.mrb[75].mxu0 }
 0x4a1   :  { %v1901_v58 = vmul.f32 0.01, %v1836_v53  ;;  %v1840_v11 = vadd.f32 %v1839_v57, %v3282_v17  ;;  %2147 = vmatprep.mubr.bf16.mxu0 %v1959_v55 }
 0x4a2   :  { %v1902_v59 = vmul.f32 0.01, %v1838_v56  ;;  %2148 = vmatmul.mubr.bf16.gmra.mrb[100].mxu0 %v1958_v52  ;;  %v1932_v61 = vmax.f32 %v1834_v50, %v1900_v38 }
 0x4a3   :  { %v1903_v60 = vmul.f32 0.01, %v1840_v11  ;;  %v1933_v1 = vmax.f32 %v1836_v53, %v1901_v58 }
 0x4a4   :  { %v1934_v0 = vmax.f32 %v1838_v56, %v1902_v59 }
 0x4a5   :  { %v1935_v2 = vmax.f32 %v1840_v11, %v1903_v60  ;;  %v1843_v39 = vpop.f32.mrb[76].mxu0 }
 0x4a6   :  { %v1844_v5 = vadd.f32 %v1843_v39, %v3279_v16  ;;  %v1845_v6 = vpop.f32.mrb[77].mxu0  ;;  %v1960_v41 = vpack.c.bf16 %v1934_v0, %v1932_v61 }
 0x4a7   :  { %v1846_v42 = vadd.f32 %v1845_v6, %v3282_v17  ;;  %v1847_v8 = vpop.f32.mrb[78].mxu0  ;;  %v1961_v12 = vpack.c.bf16 %v1935_v2, %v1933_v1 }
 0x4a8   :  { %v1904_v13 = vmul.f32 0.01, %v1844_v5  ;;  %v1848_v14 = vadd.f32 %v1847_v8, %v3279_v16  ;;  %v1849_v15 = vpop.f32.mrb[79].mxu0 }
 0x4a9   :  { %v1905_v18 = vmul.f32 0.01, %v1846_v42  ;;  %v1850_v19 = vadd.f32 %v1849_v15, %v3282_v17  ;;  %2155 = vmatprep.mubr.bf16.mxu0 %v1961_v12 }
 0x4aa   :  { %v1906_v20 = vmul.f32 0.01, %v1848_v14  ;;  %2156 = vmatmul.mubr.bf16.gmra.mrb[104].mxu0 %v1960_v41  ;;  %v1936_v22 = vmax.f32 %v1844_v5, %v1904_v13 }
 0x4ab   :  { %v1907_v21 = vmul.f32 0.01, %v1850_v19  ;;  %v1937_v24 = vmax.f32 %v1846_v42, %v1905_v18 }
 0x4ac   :  { %v1938_v23 = vmax.f32 %v1848_v14, %v1906_v20 }
 0x4ad   :  { %v1939_v25 = vmax.f32 %v1850_v19, %v1907_v21  ;;  %v1853_v26 = vpop.f32.mrb[80].mxu0 }
 0x4ae   :  { %v1962_v27 = vpack.c.bf16 %v1938_v23, %v1936_v22  ;;  %v1854_v28 = vadd.f32 %v1853_v26, %v3279_v16  ;;  %v1855_v7 = vpop.f32.mrb[81].mxu0 }
 0x4af   :  { %v1856_v29 = vadd.f32 %v1855_v7, %v3282_v17  ;;  %v1857_v30 = vpop.f32.mrb[82].mxu0  ;;  %v1963_v9 = vpack.c.bf16 %v1939_v25, %v1937_v24 }
 0x4b0   :  { %v1908_v31 = vmul.f32 0.01, %v1854_v28  ;;  %v1858_v62 = vadd.f32 %v1857_v30, %v3279_v16  ;;  %v1859_v32 = vpop.f32.mrb[83].mxu0 }
 0x4b1   :  { %v1909_v63 = vmul.f32 0.01, %v1856_v29  ;;  %v1860_v33 = vadd.f32 %v1859_v32, %v3282_v17  ;;  %2163 = vmatprep.mubr.bf16.mxu1 %v1963_v9 }
 0x4b2   :  { %v1910_v34 = vmul.f32 0.01, %v1858_v62  ;;  %2164 = vmatmul.mubr.bf16.vlgmr.msra.gmra.mrb[64].mxu1 %v1962_v27  ;;  %v1940_v35 = vmax.f32 %v1854_v28, %v1908_v31 }
 0x4b3   :  { %v1911_v3 = vmul.f32 0.01, %v1860_v33  ;;  %v1941_v40 = vmax.f32 %v1856_v29, %v1909_v63 }
 0x4b4   :  { %v1942_v4 = vmax.f32 %v1858_v62, %v1910_v34 }
 0x4b5   :  { %v1943_v43 = vmax.f32 %v1860_v33, %v1911_v3  ;;  %v1863_v36 = vpop.f32.mrb[84].mxu0 }
 0x4b6   :  { %v1864_v44 = vadd.f32 %v1863_v36, %v3279_v16  ;;  %v1865_v45 = vpop.f32.mrb[85].mxu0  ;;  %v1964_v46 = vpack.c.bf16 %v1942_v4, %v1940_v35 }
 0x4b7   :  { %v1866_v47 = vadd.f32 %v1865_v45, %v3282_v17  ;;  %v1867_v37 = vpop.f32.mrb[86].mxu0  ;;  %v1965_v48 = vpack.c.bf16 %v1943_v43, %v1941_v40 }
 0x4b8   :  { %v1912_v10 = vmul.f32 0.01, %v1864_v44  ;;  %v1868_v49 = vadd.f32 %v1867_v37, %v3279_v16  ;;  %v1869_v50 = vpop.f32.mrb[87].mxu0 }
 0x4b9   :  { %v1913_v51 = vmul.f32 0.01, %v1866_v47  ;;  %v1870_v52 = vadd.f32 %v1869_v50, %v3282_v17  ;;  %2171 = vmatprep.mubr.bf16.mxu1 %v1965_v48 }
 0x4ba   :  { %v1914_v53 = vmul.f32 0.01, %v1868_v49  ;;  %2172 = vmatmul.mubr.bf16.gmra.mrb[68].mxu1 %v1964_v46  ;;  %v1944_v55 = vmax.f32 %v1864_v44, %v1912_v10 }
 0x4bb   :  { %v1915_v54 = vmul.f32 0.01, %v1870_v52  ;;  %v1945_v56 = vmax.f32 %v1866_v47, %v1913_v51 }
 0x4bc   :  { %v1946_v38 = vmax.f32 %v1868_v49, %v1914_v53 }
 0x4bd   :  { %v1947_v57 = vmax.f32 %v1870_v52, %v1915_v54  ;;  %v1873_v58 = vpop.f32.mrb[88].mxu0 }
 0x4be   :  { %v1874_v11 = vadd.f32 %v1873_v58, %v3279_v16  ;;  %v1875_v59 = vpop.f32.mrb[89].mxu0  ;;  %v1966_v60 = vpack.c.bf16 %v1946_v38, %v1944_v55 }
 0x4bf   :  { %v1876_v61 = vadd.f32 %v1875_v59, %v3282_v17  ;;  %v1877_v0 = vpop.f32.mrb[90].mxu0  ;;  %v1967_v1 = vpack.c.bf16 %v1947_v57, %v1945_v56 }
 0x4c0   :  { %v1916_v2 = vmul.f32 0.01, %v1874_v11  ;;  %v1878_v39 = vadd.f32 %v1877_v0, %v3279_v16  ;;  %v1879_v5 = vpop.f32.mrb[91].mxu0 }
 0x4c1   :  { %v1917_v6 = vmul.f32 0.01, %v1876_v61  ;;  %v1880_v41 = vadd.f32 %v1879_v5, %v3282_v17  ;;  %2179 = vmatprep.mubr.bf16.mxu1 %v1967_v1 }
 0x4c2   :  { %v1918_v42 = vmul.f32 0.01, %v1878_v39  ;;  %2180 = vmatmul.mubr.bf16.gmra.mrb[72].mxu1 %v1966_v60  ;;  %v1948_v12 = vmax.f32 %v1874_v11, %v1916_v2 }
 0x4c3   :  { %v1919_v8 = vmul.f32 0.01, %v1880_v41  ;;  %v1949_v14 = vmax.f32 %v1876_v61, %v1917_v6 }
 0x4c4   :  { %v1950_v13 = vmax.f32 %v1878_v39, %v1918_v42 }
 0x4c5   :  { %v1951_v15 = vmax.f32 %v1880_v41, %v1919_v8  ;;  %v1883_v18 = vpop.f32.mrb[92].mxu0 }
 0x4c6   :  { %v1884_v19 = vadd.f32 %v1883_v18, %v3279_v16  ;;  %v1885_v20 = vpop.f32.mrb[93].mxu0  ;;  %v1968_v21 = vpack.c.bf16 %v1950_v13, %v1948_v12 }
 0x4c7   :  { %v1886_v22 = vadd.f32 %v1885_v20, %v3282_v17  ;;  %v1887_v23 = vpop.f32.mrb[94].mxu0  ;;  %v1969_v24 = vpack.c.bf16 %v1951_v15, %v1949_v14 }
 0x4c8   :  { %v1920_v25 = vmul.f32 0.01, %v1884_v19  ;;  %v1888_v26 = vadd.f32 %v1887_v23, %v3279_v16  ;;  %v1889_v27 = vpop.f32.mrb[95].mxu0  ;;  %v3319_v16 = vld [vmem:[%s3413_s12] ss:$0 sm:$0xff] }
 0x4c9   :  { %v1921_v28 = vmul.f32 0.01, %v1886_v22  ;;  %v1890_v7 = vadd.f32 %v1889_v27, %v3282_v17  ;;  %2187 = vmatprep.mubr.bf16.mxu1 %v1969_v24 }
 0x4ca   :  { %v1922_v29 = vmul.f32 0.01, %v1888_v26  ;;  %2188 = vmatmul.mubr.bf16.gmra.mrb[76].mxu1 %v1968_v21  ;;  %v1952_v9 = vmax.f32 %v1884_v19, %v1920_v25 }
 0x4cb   :  { %v1923_v30 = vmul.f32 0.01, %v1890_v7  ;;  %v1953_v62 = vmax.f32 %v1886_v22, %v1921_v28 }
 0x4cc   :  { %v1954_v31 = vmax.f32 %v1888_v26, %v1922_v29 }
 0x4cd   :  { %v1955_v32 = vmax.f32 %v1890_v7, %v1923_v30 }
 0x4ce   :  { %v1970_v63 = vpack.c.bf16 %v1954_v31, %v1952_v9 }
 0x4cf   :  { %v1971_v33 = vpack.c.bf16 %v1955_v32, %v1953_v62 }
 0x4d1   :  { %2195 = vmatprep.mubr.bf16.mxu1 %v1971_v33 }
 0x4d2   :  { %2196 = vmatmul.mubr.bf16.gmra.mrb[80].mxu1 %v1970_v63 }
 0x56d   :  { %v2406_v34 = vpop.f32.mrb[96].mxu0 }
 0x56e   :  { %v2407_v3 = vpop.f32.mrb[97].mxu0 }
 0x56f   :  { %v2408_v17 = vadd.f32 %v2407_v3, %v2406_v34  ;;  %v2409_v35 = vpop.f32.mrb[98].mxu0 }
 0x570   :  { %v2410_v4 = vpop.f32.mrb[99].mxu0 }
 0x571   :  { %v2142_v40 = vadd.f32 %v2408_v17, %v3319_v16  ;;  %v2411_v43 = vadd.f32 %v2410_v4, %v2409_v35 }
 0x573   :  { %2205 = vst.msk [vmem:[%s3414_s13] sm:$0xff] %vm2204_vm1, %v2142_v40  ;;  %v2145_v36 = vadd.f32 %v2411_v43, %v3319_v16 }
 0x575   :  { %2206 = vst.msk [vmem:[%s3414_s13 + $0x8] sm:$0xff] %vm2204_vm1, %v2145_v36  ;;  %v2412_v44 = vpop.f32.mrb[100].mxu0 }
 0x576   :  { %v2413_v45 = vpop.f32.mrb[101].mxu0 }
 0x577   :  { %v2414_v46 = vadd.f32 %v2413_v45, %v2412_v44  ;;  %v2415_v47 = vpop.f32.mrb[102].mxu0 }
 0x578   :  { %v2416_v37 = vpop.f32.mrb[103].mxu0 }
 0x579   :  { %v2150_v48 = vadd.f32 %v2414_v46, %v3319_v16  ;;  %v2417_v10 = vadd.f32 %v2416_v37, %v2415_v47 }
 0x57b   :  { %2207 = vst.msk [vmem:[%s3414_s13 + $0x10] sm:$0xff] %vm2204_vm1, %v2150_v48  ;;  %v2153_v49 = vadd.f32 %v2417_v10, %v3319_v16 }
 0x57d   :  { %2208 = vst.msk [vmem:[%s3414_s13 + $0x18] sm:$0xff] %vm2204_vm1, %v2153_v49  ;;  %v2418_v50 = vpop.f32.mrb[104].mxu0 }
 0x57e   :  { %v2419_v51 = vpop.f32.mrb[105].mxu0 }
 0x57f   :  { %v2420_v52 = vadd.f32 %v2419_v51, %v2418_v50  ;;  %v2421_v53 = vpop.f32.mrb[106].mxu0 }
 0x580   :  { %v2422_v54 = vpop.f32.mrb[107].mxu0 }
 0x581   :  { %v2158_v55 = vadd.f32 %v2420_v52, %v3319_v16  ;;  %v2423_v38 = vadd.f32 %v2422_v54, %v2421_v53 }
 0x583   :  { %2209 = vst.msk [vmem:[%s3414_s13 + $0x20] sm:$0xff] %vm2204_vm1, %v2158_v55  ;;  %v2161_v56 = vadd.f32 %v2423_v38, %v3319_v16 }
 0x585   :  { %2210 = vst.msk [vmem:[%s3414_s13 + $0x28] sm:$0xff] %vm2204_vm1, %v2161_v56  ;;  %v2424_v57 = vpop.f32.mrb[64].mxu1 }
 0x586   :  { %v2425_v58 = vpop.f32.mrb[65].mxu1 }
 0x587   :  { %v2426_v11 = vadd.f32 %v2425_v58, %v2424_v57  ;;  %v2427_v59 = vpop.f32.mrb[66].mxu1 }
 0x588   :  { %v2428_v60 = vpop.f32.mrb[67].mxu1 }
 0x589   :  { %v2166_v61 = vadd.f32 %v2426_v11, %v3319_v16  ;;  %v2429_v0 = vadd.f32 %v2428_v60, %v2427_v59 }
 0x58b   :  { %2211 = vst.msk [vmem:[%s3414_s13 + $0x30] sm:$0xff] %vm2204_vm1, %v2166_v61  ;;  %v2169_v1 = vadd.f32 %v2429_v0, %v3319_v16 }
 0x58d   :  { %2212 = vst.msk [vmem:[%s3414_s13 + $0x38] sm:$0xff] %vm2204_vm1, %v2169_v1  ;;  %v2430_v2 = vpop.f32.mrb[68].mxu1 }
 0x58e   :  { %v2431_v39 = vpop.f32.mrb[69].mxu1 }
 0x58f   :  { %v2432_v5 = vadd.f32 %v2431_v39, %v2430_v2  ;;  %v2433_v6 = vpop.f32.mrb[70].mxu1 }
 0x590   :  { %v2434_v41 = vpop.f32.mrb[71].mxu1 }
 0x591   :  { %v2174_v42 = vadd.f32 %v2432_v5, %v3319_v16  ;;  %v2435_v8 = vadd.f32 %v2434_v41, %v2433_v6 }
 0x593   :  { %2213 = vst.msk [vmem:[%s3414_s13 + $0x40] sm:$0xff] %vm2204_vm1, %v2174_v42  ;;  %v2177_v12 = vadd.f32 %v2435_v8, %v3319_v16 }
 0x595   :  { %2214 = vst.msk [vmem:[%s3414_s13 + $0x48] sm:$0xff] %vm2204_vm1, %v2177_v12  ;;  %v2436_v13 = vpop.f32.mrb[72].mxu1 }
 0x596   :  { %v2437_v14 = vpop.f32.mrb[73].mxu1 }
 0x597   :  { %v2438_v15 = vadd.f32 %v2437_v14, %v2436_v13  ;;  %v2439_v18 = vpop.f32.mrb[74].mxu1 }
 0x598   :  { %v2440_v19 = vpop.f32.mrb[75].mxu1 }
 0x599   :  { %v2182_v20 = vadd.f32 %v2438_v15, %v3319_v16  ;;  %v2441_v21 = vadd.f32 %v2440_v19, %v2439_v18 }
 0x59b   :  { %2215 = vst.msk [vmem:[%s3414_s13 + $0x50] sm:$0xff] %vm2204_vm1, %v2182_v20  ;;  %v2185_v22 = vadd.f32 %v2441_v21, %v3319_v16 }
 0x59d   :  { %2216 = vst.msk [vmem:[%s3414_s13 + $0x58] sm:$0xff] %vm2204_vm1, %v2185_v22  ;;  %v2442_v23 = vpop.f32.mrb[76].mxu1 }
 0x59e   :  { %v2443_v24 = vpop.f32.mrb[77].mxu1 }
 0x59f   :  { %v2444_v25 = vadd.f32 %v2443_v24, %v2442_v23  ;;  %v2445_v26 = vpop.f32.mrb[78].mxu1 }
 0x5a0   :  { %v2446_v27 = vpop.f32.mrb[79].mxu1 }
 0x5a1   :  { %v2190_v28 = vadd.f32 %v2444_v25, %v3319_v16  ;;  %v2447_v7 = vadd.f32 %v2446_v27, %v2445_v26 }
 0x5a3   :  { %2217 = vst.msk [vmem:[%s3414_s13 + $0x60] sm:$0xff] %vm2204_vm1, %v2190_v28  ;;  %v2193_v29 = vadd.f32 %v2447_v7, %v3319_v16 }
 0x5a5   :  { %2218 = vst.msk [vmem:[%s3414_s13 + $0x68] sm:$0xff] %vm2204_vm1, %v2193_v29  ;;  %v2448_v30 = vpop.f32.mrb[80].mxu1 }
 0x5a6   :  { %v2449_v9 = vpop.f32.mrb[81].mxu1 }
 0x5a7   :  { %v2450_v31 = vadd.f32 %v2449_v9, %v2448_v30  ;;  %v2451_v62 = vpop.f32.mrb[82].mxu1 }
 0x5a8   :  { %v2452_v32 = vpop.f32.mrb[83].mxu1 }
 0x5a9   :  { %v2198_v63 = vadd.f32 %v2450_v31, %v3319_v16  ;;  %v2453_v33 = vadd.f32 %v2452_v32, %v2451_v62 }
 0x5ab   :  { %2219 = vst.msk [vmem:[%s3414_s13 + $0x70] sm:$0xff] %vm2204_vm1, %v2198_v63  ;;  %v2201_v34 = vadd.f32 %v2453_v33, %v3319_v16 }
 0x5ad   :  { %2220 = vst.msk [vmem:[%s3414_s13 + $0x78] sm:$0xff] %vm2204_vm1, %v2201_v34 }
 0x5ae   :  { %2225 = vsyncpa [#allocation3], 1 }
 0x5af   :  { %2226 = vsyncpa [#allocation5], 1 }

</bundles_post_ra>
